<compile_context>
chip_gen: v7x
topology: tpu7x:2x2x1
jax: 0.10.0
libtpu: 0.0.40
codegen_flags: <defaults>
</compile_context>

<pallas_src>
import functools
import math

import jax
import jax.numpy as jnp
from jax import lax
from jax.experimental import pallas as pl
from jax.experimental.pallas import tpu as pltpu


# --------------------------------------------------------------------------
# Kernel
# --------------------------------------------------------------------------
def _block_kernel(x_ref, ln1w_ref, ln1b_ref, w_attn_ref, b_attn_ref,
                  w_proj_ref, b_proj_ref, ln2w_ref, ln2b_ref,
                  w_fc_ref, b_fc_ref, w_fc2_ref, b_fc2_ref,
                  o_ref, q_scr, k_scr, v_scr,
                  *, n_head, head_size_qkv, kv_tile):
    f32 = jnp.float32
    bf16 = jnp.bfloat16
    Bb, T, C = x_ref.shape
    H = head_size_qkv
    hd = H // n_head
    M = Bb * T                        # rows fed to every GEMM this grid step
    nHB = n_head * Bb
    num_kv = T // kv_tile

    x = x_ref[...].astype(f32).reshape(M, C)

    def layer_norm(h, w_ref, b_ref):          # f32 statistics
        mu = jnp.mean(h, axis=-1, keepdims=True)
        var = jnp.mean(jnp.square(h - mu), axis=-1, keepdims=True)
        return (h - mu) * lax.rsqrt(var + 1e-5) * w_ref[0] + b_ref[0]

    # ---------------- attention branch ----------------
    h1 = layer_norm(x, ln1w_ref, ln1b_ref)
    # 1/sqrt(hd) is pre-folded into the q columns of w_attn / b_attn (host side)
    qkv = jnp.dot(h1.astype(bf16), w_attn_ref[...],
                  preferred_element_type=f32) + b_attn_ref[0]       # (M, 3H) f32

    # Stage q / k / v head-major straight into VMEM scratch (no stack / concat
    # intermediates).  Layout: (n_head * Bb, T, hd).
    for h in range(n_head):
        dst = pl.ds(h * Bb, Bb)
        q_scr[dst, :, :] = qkv[:, h * hd:(h + 1) * hd].reshape(Bb, T, hd).astype(bf16)
        k_scr[dst, :, :] = qkv[:, H + h * hd:H + (h + 1) * hd].reshape(Bb, T, hd).astype(bf16)
        v_scr[dst, :, :] = qkv[:, 2 * H + h * hd:2 * H + (h + 1) * hd].reshape(Bb, T, hd).astype(bf16)

    qh = q_scr[...]                                                  # (nHB, T, hd) bf16

    # per-tile causal mask pieces (built once; reused every KV tile)
    row_ids = lax.broadcasted_iota(jnp.int32, (T, kv_tile), 0)
    col_ids = lax.broadcasted_iota(jnp.int32, (T, kv_tile), 1)

    def kv_step(i, carry):
        m, l, acc = carry
        start = pl.multiple_of(i * kv_tile, kv_tile)
        kt = k_scr[:, pl.ds(start, kv_tile), :]                      # (nHB, kv_tile, hd)
        vt = v_scr[:, pl.ds(start, kv_tile), :]
        # batched QK^T over all (head, batch) pairs for this KV tile
        s = jnp.einsum('bqd,bkd->bqk', qh, kt,
                       preferred_element_type=f32)                   # (nHB, T, kv_tile) f32
        mask = (col_ids + i * kv_tile) <= row_ids                    # causal, per tile
        s = jnp.where(mask[None, :, :], s, -1e30)
        m_new = jnp.maximum(m, jnp.max(s, axis=-1, keepdims=True))
        alpha = jnp.exp(m - m_new)
        p = jnp.exp(s - m_new)
        l_new = alpha * l + jnp.sum(p, axis=-1, keepdims=True)
        pv = jnp.einsum('bqk,bkd->bqd', p.astype(bf16), vt,
                        preferred_element_type=f32)                  # (nHB, T, hd)
        acc_new = alpha * acc + pv
        return m_new, l_new, acc_new

    m0 = jnp.full((nHB, T, 1), -1e30, f32)
    l0 = jnp.zeros((nHB, T, 1), f32)
    acc0 = jnp.zeros((nHB, T, hd), f32)
    m, l, acc = lax.fori_loop(0, num_kv, kv_step, (m0, l0, acc0),
                              unroll=(num_kv <= 8))
    y = acc * pl.reciprocal(l, approx=True)                          # (nHB, T, hd) f32

    # output projection: per-head MXU accumulation into (M, C); avoids any
    # head concat / lane re-shuffle.  w_proj_ref is (n_head, hd, C), bf16.
    y3 = y.reshape(n_head, M, hd)
    yp = jnp.zeros((M, C), f32)
    for h in range(n_head):
        yp = yp + jnp.dot(y3[h].astype(bf16), w_proj_ref[h],
                          preferred_element_type=f32)
    x1 = x + yp + b_proj_ref[0]                                      # residual 1

    # ---------------- MLP branch ----------------
    h2 = layer_norm(x1, ln2w_ref, ln2b_ref)
    f = jnp.dot(h2.astype(bf16), w_fc_ref[...],
                preferred_element_type=f32) + b_fc_ref[0]
    # exact (erf-based) GELU, matching torch.nn.GELU() default
    f = f * (0.5 + 0.5 * lax.erf(f * (1.0 / math.sqrt(2.0))))
    f = jnp.dot(f.astype(bf16), w_fc2_ref[...],
                preferred_element_type=f32) + b_fc2_ref[0]

    o_ref[...] = (x1 + f).reshape(Bb, T, C).astype(o_ref.dtype)      # residual 2


# --------------------------------------------------------------------------
# Host-side helpers
# --------------------------------------------------------------------------
def _vmem_budget_and_target_rows():
    """Generation-aware VMEM limit and M-row target (v7x: 64 MiB VMEM)."""
    try:
        cap = int(pltpu.get_tpu_info().vmem_capacity_bytes)
    except Exception:                       # conservative fallback
        cap = 64 * 1024 * 1024
    vmem_limit = int(min(cap * 0.85, 110 * 1024 * 1024))
    target_rows = 1024 if cap >= 96 * 1024 * 1024 else 512
    return vmem_limit, target_rows


def _pick_batch_block(B, T, target_rows):
    """Largest divisor Bb of B with Bb*T <= target_rows; prefer grid >= 2."""
    cands = [d for d in range(1, B + 1)
             if B % d == 0 and d * T <= max(target_rows, T)]
    best = max(cands)
    if best == B and B > 1:                 # keep >=2 grid steps for megacore
        smaller = [d for d in cands if d < B]
        if smaller:
            best = max(smaller)
    return best


def _pick_kv_tile(T, max_tile=256):
    """KV tile: full T when small, otherwise a 128-multiple divisor of T."""
    if T <= max_tile:
        return T
    for t in range(max_tile, 127, -1):
        if T % t == 0 and t % 128 == 0:
            return t
    for t in range(max_tile, 0, -1):
        if T % t == 0:
            return t
    return T


def prepare_block_params(params, *, n_head, head_size_qkv):
    """One-time parameter prep: bf16 weight casts, q-scale folding, head-split
    c_proj.  Do this once at init, NOT per forward call."""
    H = head_size_qkv
    hd = H // n_head
    C = params["w_proj"].shape[1]
    scale = 1.0 / math.sqrt(hd)
    bf = jnp.bfloat16
    f32 = jnp.float32

    w_attn = params["w_attn"].astype(f32).at[:, :H].multiply(scale)
    b_attn = params["b_attn"].astype(f32).at[:, :H].multiply(scale)

    return dict(
        ln1_w=params["ln1_w"].astype(f32),
        ln1_b=params["ln1_b"].astype(f32),
        w_attn=w_attn.astype(bf),
        b_attn=b_attn,                                      # f32, added post-acc
        w_proj_h=params["w_proj"].reshape(n_head, hd, C).astype(bf),
        b_proj=params["b_proj"].astype(f32),
        ln2_w=params["ln2_w"].astype(f32),
        ln2_b=params["ln2_b"].astype(f32),
        w_fc=params["w_fc"].astype(bf),
        b_fc=params["b_fc"].astype(f32),
        w_fc2=params["w_fc2"].astype(bf),
        b_fc2=params["b_fc2"].astype(f32),
    )


def block_forward(x, prepared, *, n_head, head_size_qkv, kv_tile=None):
    B, T, C = x.shape
    H = head_size_qkv
    assert H % n_head == 0
    hd = H // n_head
    F_dim = prepared["w_fc"].shape[1]

    vmem_limit, target_rows = _vmem_budget_and_target_rows()
    Bb = _pick_batch_block(B, T, target_rows)
    grid = (B // Bb,)
    if kv_tile is None:
        kv_tile = _pick_kv_tile(T)
    assert T % kv_tile == 0
    nHB = n_head * Bb

    kernel = functools.partial(_block_kernel, n_head=n_head,
                               head_size_qkv=H, kv_tile=kv_tile)

    def inv(shape):
        # grid-invariant block: single-buffered (no pointless double buffer)
        return pl.BlockSpec(shape, lambda b: (0,) * len(shape),
                            pipeline_mode=pl.Buffered(1))

    in_specs = [
        pl.BlockSpec((Bb, T, C), lambda b: (b, 0, 0)),   # x
        inv((1, C)), inv((1, C)),                        # ln1 w, b
        inv((C, 3 * H)), inv((1, 3 * H)),                # c_attn (scale pre-folded)
        inv((n_head, hd, C)), inv((1, C)),               # attn c_proj (head-split), bias
        inv((1, C)), inv((1, C)),                        # ln2 w, b
        inv((C, F_dim)), inv((1, F_dim)),                # mlp c_fc
        inv((F_dim, C)), inv((1, C)),                    # mlp c_proj
    ]
    out_spec = pl.BlockSpec((Bb, T, C), lambda b: (b, 0, 0))

    return pl.pallas_call(
        kernel,
        out_shape=jax.ShapeDtypeStruct((B, T, C), x.dtype),
        grid_spec=pltpu.PrefetchScalarGridSpec(
            num_scalar_prefetch=0,
            grid=grid,
            in_specs=in_specs,
            out_specs=out_spec,
            scratch_shapes=[pltpu.VMEM((nHB, T, hd), jnp.bfloat16),   # q (head-major)
                            pltpu.VMEM((nHB, T, hd), jnp.bfloat16),   # k
                            pltpu.VMEM((nHB, T, hd), jnp.bfloat16)]), # v
        compiler_params=pltpu.CompilerParams(
            dimension_semantics=("parallel",),
            vmem_limit_bytes=vmem_limit),
    )(x,
      prepared["ln1_w"], prepared["ln1_b"],
      prepared["w_attn"], prepared["b_attn"],
      prepared["w_proj_h"], prepared["b_proj"],
      prepared["ln2_w"], prepared["ln2_b"],
      prepared["w_fc"], prepared["b_fc"],
      prepared["w_fc2"], prepared["b_fc2"])


# --------------------------------------------------------------------------
# Pure-JAX reference (matches the PyTorch module's math)
# --------------------------------------------------------------------------
def block_ref(x, p, n_head, H):
    def ln(h, w, b):
        mu = h.mean(-1, keepdims=True)
        var = ((h - mu) ** 2).mean(-1, keepdims=True)
        return (h - mu) / jnp.sqrt(var + 1e-5) * w + b

    B, T, C = x.shape
    hd = H // n_head
    h1 = ln(x, p["ln1_w"][0], p["ln1_b"][0])
    qkv = h1 @ p["w_attn"] + p["b_attn"][0]
    q, k, v = jnp.split(qkv, [H, 2 * H], axis=-1)
    q = q.reshape(B, T, n_head, hd).transpose(0, 2, 1, 3)
    k = k.reshape(B, T, n_head, hd).transpose(0, 2, 1, 3)
    v = v.reshape(B, T, n_head, hd).transpose(0, 2, 1, 3)
    att = jnp.einsum("bhqd,bhkd->bhqk", q, k) / math.sqrt(hd)
    mask = jnp.tril(jnp.ones((T, T), bool))
    att = jnp.where(mask, att, -jnp.inf)
    att = jax.nn.softmax(att, axis=-1)
    y = jnp.einsum("bhqk,bhkd->bhqd", att, v)
    y = y.transpose(0, 2, 1, 3).reshape(B, T, H)
    y = y @ p["w_proj"] + p["b_proj"][0]
    x1 = x + y
    h2 = ln(x1, p["ln2_w"][0], p["ln2_b"][0])
    f = h2 @ p["w_fc"] + p["b_fc"][0]
    f = 0.5 * f * (1.0 + lax.erf(f / math.sqrt(2.0)))
    f = f @ p["w_fc2"] + p["b_fc2"][0]
    return x1 + f


if __name__ == "__main__":
    # small shapes consistent with the module's config
    B, T, C = 2, 8, 32             # batch, block_size (seq), n_embd
    n_head, H, F_dim = 4, 32, 64   # n_head, head_size_qkv, ffw_dim

    key = jax.random.PRNGKey(0)
    ks = jax.random.split(key, 10)
    s = 0.02
    params = dict(
        ln1_w=jnp.ones((1, C), jnp.float32),
        ln1_b=jnp.zeros((1, C), jnp.float32),
        w_attn=(s * jax.random.normal(ks[0], (C, 3 * H))).astype(jnp.float32),
        b_attn=(s * jax.random.normal(ks[1], (1, 3 * H))).astype(jnp.float32),
        w_proj=(s * jax.random.normal(ks[2], (H, C))).astype(jnp.float32),
        b_proj=(s * jax.random.normal(ks[3], (1, C))).astype(jnp.float32),
        ln2_w=jnp.ones((1, C), jnp.float32),
        ln2_b=jnp.zeros((1, C), jnp.float32),
        w_fc=(s * jax.random.normal(ks[4], (C, F_dim))).astype(jnp.float32),
        b_fc=(s * jax.random.normal(ks[5], (1, F_dim))).astype(jnp.float32),
        w_fc2=(s * jax.random.normal(ks[6], (F_dim, C))).astype(jnp.float32),
        b_fc2=(s * jax.random.normal(ks[7], (1, C))).astype(jnp.float32),
    )
    prepared = prepare_block_params(params, n_head=n_head, head_size_qkv=H)

    # 1) default path (single KV tile)
    x = jax.random.normal(ks[8], (B, T, C), jnp.float32)
    out = block_forward(x, prepared, n_head=n_head, head_size_qkv=H)
    jax.block_until_ready(out)
    ref = block_ref(x, params, n_head, H)
    assert out.shape == (B, T, C)
    assert jnp.allclose(out, ref, atol=2e-2, rtol=2e-2), "mismatch vs reference"

    # 2) exercise the multi-tile flash loop (num_kv = 2)
    T2 = 32
    x2 = jax.random.normal(ks[9], (B, T2, C), jnp.float32)
    out2 = block_forward(x2, prepared, n_head=n_head, head_size_qkv=H, kv_tile=16)
    jax.block_until_ready(out2)
    ref2 = block_ref(x2, params, n_head, H)
    assert jnp.allclose(out2, ref2, atol=2e-2, rtol=2e-2), "flash-loop mismatch"

    print("KERNEL_OK")
</pallas_src>

<mosaic_0001>
module attributes {stable_mosaic.version = 11 : i64} {
  func.func @_block_kernel(%arg0: i32, %arg1: memref<1x8x32xf32, #tpu.memory_space<vmem>>, %arg2: memref<1x32xf32, #tpu.memory_space<vmem>>, %arg3: memref<1x32xf32, #tpu.memory_space<vmem>>, %arg4: memref<32x96xbf16, #tpu.memory_space<vmem>>, %arg5: memref<1x96xf32, #tpu.memory_space<vmem>>, %arg6: memref<4x8x32xbf16, #tpu.memory_space<vmem>>, %arg7: memref<1x32xf32, #tpu.memory_space<vmem>>, %arg8: memref<1x32xf32, #tpu.memory_space<vmem>>, %arg9: memref<1x32xf32, #tpu.memory_space<vmem>>, %arg10: memref<32x64xbf16, #tpu.memory_space<vmem>>, %arg11: memref<1x64xf32, #tpu.memory_space<vmem>>, %arg12: memref<64x32xbf16, #tpu.memory_space<vmem>>, %arg13: memref<1x32xf32, #tpu.memory_space<vmem>>, %arg14: memref<1x8x32xf32, #tpu.memory_space<vmem>>, %arg15: memref<4x8x8xbf16, #tpu.memory_space<vmem>>, %arg16: memref<4x8x8xbf16, #tpu.memory_space<vmem>>, %arg17: memref<4x8x8xbf16, #tpu.memory_space<vmem>>) attributes {dimension_semantics = [#tpu.dimension_semantics<parallel>], iteration_bounds = array<i64: 2>, scalar_prefetch = 0 : i64, scratch_operands = 3 : i64, tpu.core_type = #tpu.core_type<tc>, window_params = [{transform_indices = @transform_0, window_bounds = array<i64: 1, 8, 32>}, {pipeline_mode = #tpu.pipeline_mode<synchronous>, transform_indices = @transform_1, window_bounds = array<i64: 1, 32>}, {pipeline_mode = #tpu.pipeline_mode<synchronous>, transform_indices = @transform_2, window_bounds = array<i64: 1, 32>}, {pipeline_mode = #tpu.pipeline_mode<synchronous>, transform_indices = @transform_3, window_bounds = array<i64: 32, 96>}, {pipeline_mode = #tpu.pipeline_mode<synchronous>, transform_indices = @transform_4, window_bounds = array<i64: 1, 96>}, {pipeline_mode = #tpu.pipeline_mode<synchronous>, transform_indices = @transform_5, window_bounds = array<i64: 4, 8, 32>}, {pipeline_mode = #tpu.pipeline_mode<synchronous>, transform_indices = @transform_6, window_bounds = array<i64: 1, 32>}, {pipeline_mode = #tpu.pipeline_mode<synchronous>, transform_indices = @transform_7, window_bounds = array<i64: 1, 32>}, {pipeline_mode = #tpu.pipeline_mode<synchronous>, transform_indices = @transform_8, window_bounds = array<i64: 1, 32>}, {pipeline_mode = #tpu.pipeline_mode<synchronous>, transform_indices = @transform_9, window_bounds = array<i64: 32, 64>}, {pipeline_mode = #tpu.pipeline_mode<synchronous>, transform_indices = @transform_10, window_bounds = array<i64: 1, 64>}, {pipeline_mode = #tpu.pipeline_mode<synchronous>, transform_indices = @transform_11, window_bounds = array<i64: 64, 32>}, {pipeline_mode = #tpu.pipeline_mode<synchronous>, transform_indices = @transform_12, window_bounds = array<i64: 1, 32>}, {transform_indices = @transform_13, window_bounds = array<i64: 1, 8, 32>}]} {
    %c0 = arith.constant 0 : index
    %c0_0 = arith.constant 0 : index
    %c0_1 = arith.constant 0 : index
    %0 = vector.load %arg1[%c0, %c0_0, %c0_1] : memref<1x8x32xf32, #tpu.memory_space<vmem>>, vector<1x8x32xf32>
    %1 = vector.shape_cast %0 : vector<1x8x32xf32> to vector<8x32xf32>
    %cst = arith.constant dense<0.000000e+00> : vector<8xf32>
    %2 = vector.multi_reduction <add>, %1, %cst [1] : vector<8x32xf32> to vector<8xf32>
    %3 = vector.shape_cast %2 : vector<8xf32> to vector<8x1xf32>
    %cst_2 = arith.constant 3.200000e+01 : f32
    %4 = vector.broadcast %cst_2 : f32 to vector<8x1xf32>
    %5 = arith.divf %3, %4 : vector<8x1xf32>
    %6 = vector.broadcast %5 : vector<8x1xf32> to vector<8x32xf32>
    %7 = arith.subf %1, %6 : vector<8x32xf32>
    %8 = arith.mulf %7, %7 : vector<8x32xf32>
    %cst_3 = arith.constant dense<0.000000e+00> : vector<8xf32>
    %9 = vector.multi_reduction <add>, %8, %cst_3 [1] : vector<8x32xf32> to vector<8xf32>
    %10 = vector.shape_cast %9 : vector<8xf32> to vector<8x1xf32>
    %cst_4 = arith.constant 3.200000e+01 : f32
    %11 = vector.broadcast %cst_4 : f32 to vector<8x1xf32>
    %12 = arith.divf %10, %11 : vector<8x1xf32>
    %13 = vector.broadcast %5 : vector<8x1xf32> to vector<8x32xf32>
    %14 = arith.subf %1, %13 : vector<8x32xf32>
    %cst_5 = arith.constant 9.99999974E-6 : f32
    %15 = vector.broadcast %cst_5 : f32 to vector<8x1xf32>
    %16 = arith.addf %12, %15 : vector<8x1xf32>
    %17 = math.rsqrt %16 : vector<8x1xf32>
    %18 = vector.broadcast %17 : vector<8x1xf32> to vector<8x32xf32>
    %19 = arith.mulf %14, %18 : vector<8x32xf32>
    %c0_6 = arith.constant 0 : index
    %c0_7 = arith.constant 0 : index
    %20 = vector.load %arg2[%c0_6, %c0_7] : memref<1x32xf32, #tpu.memory_space<vmem>>, vector<1x32xf32>
    %21 = vector.shape_cast %20 : vector<1x32xf32> to vector<32xf32>
    %22 = vector.shape_cast %21 : vector<32xf32> to vector<1x32xf32>
    %23 = vector.broadcast %22 : vector<1x32xf32> to vector<8x32xf32>
    %24 = arith.mulf %19, %23 : vector<8x32xf32>
    %c0_8 = arith.constant 0 : index
    %c0_9 = arith.constant 0 : index
    %25 = vector.load %arg3[%c0_8, %c0_9] : memref<1x32xf32, #tpu.memory_space<vmem>>, vector<1x32xf32>
    %26 = vector.shape_cast %25 : vector<1x32xf32> to vector<32xf32>
    %27 = vector.shape_cast %26 : vector<32xf32> to vector<1x32xf32>
    %28 = vector.broadcast %27 : vector<1x32xf32> to vector<8x32xf32>
    %29 = arith.addf %24, %28 : vector<8x32xf32>
    %30 = arith.truncf %29 : vector<8x32xf32> to vector<8x32xbf16>
    %c0_10 = arith.constant 0 : index
    %c0_11 = arith.constant 0 : index
    %31 = vector.load %arg4[%c0_10, %c0_11] : memref<32x96xbf16, #tpu.memory_space<vmem>>, vector<32x96xbf16>
    %cst_12 = arith.constant dense<0.000000e+00> : vector<8x96xf32>
    %32 = tpu.matmul %30, %31, %cst_12 {dimension_numbers = #tpu.dot_dimension_numbers<[1], [0], [0], [1], [0, 0, 1, 1], [], []>} : vector<8x32xbf16>, vector<32x96xbf16>, vector<8x96xf32> -> vector<8x96xf32>
    %c0_13 = arith.constant 0 : index
    %c0_14 = arith.constant 0 : index
    %33 = vector.load %arg5[%c0_13, %c0_14] : memref<1x96xf32, #tpu.memory_space<vmem>>, vector<1x96xf32>
    %34 = vector.shape_cast %33 : vector<1x96xf32> to vector<96xf32>
    %35 = vector.shape_cast %34 : vector<96xf32> to vector<1x96xf32>
    %36 = vector.broadcast %35 : vector<1x96xf32> to vector<8x96xf32>
    %37 = arith.addf %32, %36 : vector<8x96xf32>
    %38 = vector.extract_strided_slice %37 {offsets = [0, 0], sizes = [8, 8], strides = [1, 1]} : vector<8x96xf32> to vector<8x8xf32>
    %39 = vector.shape_cast %38 : vector<8x8xf32> to vector<1x8x8xf32>
    %40 = arith.truncf %39 : vector<1x8x8xf32> to vector<1x8x8xbf16>
    %c0_15 = arith.constant 0 : index
    %c0_16 = arith.constant 0 : index
    %c0_17 = arith.constant 0 : index
    %41 = vector.load %arg15[%c0_15, %c0_16, %c0_17] : memref<4x8x8xbf16, #tpu.memory_space<vmem>>, vector<1x8x8xbf16>
    tpu.vector_store %arg15[%c0_15, %c0_16, %c0_17], %40 {strides = array<i32>} : memref<4x8x8xbf16, #tpu.memory_space<vmem>>, vector<1x8x8xbf16>,
    %42 = vector.extract_strided_slice %37 {offsets = [0, 32], sizes = [8, 8], strides = [1, 1]} : vector<8x96xf32> to vector<8x8xf32>
    %43 = vector.shape_cast %42 : vector<8x8xf32> to vector<1x8x8xf32>
    %44 = arith.truncf %43 : vector<1x8x8xf32> to vector<1x8x8xbf16>
    %c0_18 = arith.constant 0 : index
    %c0_19 = arith.constant 0 : index
    %c0_20 = arith.constant 0 : index
    %45 = vector.load %arg16[%c0_18, %c0_19, %c0_20] : memref<4x8x8xbf16, #tpu.memory_space<vmem>>, vector<1x8x8xbf16>
    tpu.vector_store %arg16[%c0_18, %c0_19, %c0_20], %44 {strides = array<i32>} : memref<4x8x8xbf16, #tpu.memory_space<vmem>>, vector<1x8x8xbf16>,
    %46 = vector.extract_strided_slice %37 {offsets = [0, 64], sizes = [8, 8], strides = [1, 1]} : vector<8x96xf32> to vector<8x8xf32>
    %47 = vector.shape_cast %46 : vector<8x8xf32> to vector<1x8x8xf32>
    %48 = arith.truncf %47 : vector<1x8x8xf32> to vector<1x8x8xbf16>
    %c0_21 = arith.constant 0 : index
    %c0_22 = arith.constant 0 : index
    %c0_23 = arith.constant 0 : index
    %49 = vector.load %arg17[%c0_21, %c0_22, %c0_23] : memref<4x8x8xbf16, #tpu.memory_space<vmem>>, vector<1x8x8xbf16>
    tpu.vector_store %arg17[%c0_21, %c0_22, %c0_23], %48 {strides = array<i32>} : memref<4x8x8xbf16, #tpu.memory_space<vmem>>, vector<1x8x8xbf16>,
    %50 = vector.extract_strided_slice %37 {offsets = [0, 8], sizes = [8, 8], strides = [1, 1]} : vector<8x96xf32> to vector<8x8xf32>
    %51 = vector.shape_cast %50 : vector<8x8xf32> to vector<1x8x8xf32>
    %52 = arith.truncf %51 : vector<1x8x8xf32> to vector<1x8x8xbf16>
    %c1 = arith.constant 1 : index
    %c0_24 = arith.constant 0 : index
    %c0_25 = arith.constant 0 : index
    %53 = vector.load %arg15[%c1, %c0_24, %c0_25] : memref<4x8x8xbf16, #tpu.memory_space<vmem>>, vector<1x8x8xbf16>
    tpu.vector_store %arg15[%c1, %c0_24, %c0_25], %52 {strides = array<i32>} : memref<4x8x8xbf16, #tpu.memory_space<vmem>>, vector<1x8x8xbf16>,
    %54 = vector.extract_strided_slice %37 {offsets = [0, 40], sizes = [8, 8], strides = [1, 1]} : vector<8x96xf32> to vector<8x8xf32>
    %55 = vector.shape_cast %54 : vector<8x8xf32> to vector<1x8x8xf32>
    %56 = arith.truncf %55 : vector<1x8x8xf32> to vector<1x8x8xbf16>
    %c1_26 = arith.constant 1 : index
    %c0_27 = arith.constant 0 : index
    %c0_28 = arith.constant 0 : index
    %57 = vector.load %arg16[%c1_26, %c0_27, %c0_28] : memref<4x8x8xbf16, #tpu.memory_space<vmem>>, vector<1x8x8xbf16>
    tpu.vector_store %arg16[%c1_26, %c0_27, %c0_28], %56 {strides = array<i32>} : memref<4x8x8xbf16, #tpu.memory_space<vmem>>, vector<1x8x8xbf16>,
    %58 = vector.extract_strided_slice %37 {offsets = [0, 72], sizes = [8, 8], strides = [1, 1]} : vector<8x96xf32> to vector<8x8xf32>
    %59 = vector.shape_cast %58 : vector<8x8xf32> to vector<1x8x8xf32>
    %60 = arith.truncf %59 : vector<1x8x8xf32> to vector<1x8x8xbf16>
    %c1_29 = arith.constant 1 : index
    %c0_30 = arith.constant 0 : index
    %c0_31 = arith.constant 0 : index
    %61 = vector.load %arg17[%c1_29, %c0_30, %c0_31] : memref<4x8x8xbf16, #tpu.memory_space<vmem>>, vector<1x8x8xbf16>
    tpu.vector_store %arg17[%c1_29, %c0_30, %c0_31], %60 {strides = array<i32>} : memref<4x8x8xbf16, #tpu.memory_space<vmem>>, vector<1x8x8xbf16>,
    %62 = vector.extract_strided_slice %37 {offsets = [0, 16], sizes = [8, 8], strides = [1, 1]} : vector<8x96xf32> to vector<8x8xf32>
    %63 = vector.shape_cast %62 : vector<8x8xf32> to vector<1x8x8xf32>
    %64 = arith.truncf %63 : vector<1x8x8xf32> to vector<1x8x8xbf16>
    %c2 = arith.constant 2 : index
    %c0_32 = arith.constant 0 : index
    %c0_33 = arith.constant 0 : index
    %65 = vector.load %arg15[%c2, %c0_32, %c0_33] : memref<4x8x8xbf16, #tpu.memory_space<vmem>>, vector<1x8x8xbf16>
    tpu.vector_store %arg15[%c2, %c0_32, %c0_33], %64 {strides = array<i32>} : memref<4x8x8xbf16, #tpu.memory_space<vmem>>, vector<1x8x8xbf16>,
    %66 = vector.extract_strided_slice %37 {offsets = [0, 48], sizes = [8, 8], strides = [1, 1]} : vector<8x96xf32> to vector<8x8xf32>
    %67 = vector.shape_cast %66 : vector<8x8xf32> to vector<1x8x8xf32>
    %68 = arith.truncf %67 : vector<1x8x8xf32> to vector<1x8x8xbf16>
    %c2_34 = arith.constant 2 : index
    %c0_35 = arith.constant 0 : index
    %c0_36 = arith.constant 0 : index
    %69 = vector.load %arg16[%c2_34, %c0_35, %c0_36] : memref<4x8x8xbf16, #tpu.memory_space<vmem>>, vector<1x8x8xbf16>
    tpu.vector_store %arg16[%c2_34, %c0_35, %c0_36], %68 {strides = array<i32>} : memref<4x8x8xbf16, #tpu.memory_space<vmem>>, vector<1x8x8xbf16>,
    %70 = vector.extract_strided_slice %37 {offsets = [0, 80], sizes = [8, 8], strides = [1, 1]} : vector<8x96xf32> to vector<8x8xf32>
    %71 = vector.shape_cast %70 : vector<8x8xf32> to vector<1x8x8xf32>
    %72 = arith.truncf %71 : vector<1x8x8xf32> to vector<1x8x8xbf16>
    %c2_37 = arith.constant 2 : index
    %c0_38 = arith.constant 0 : index
    %c0_39 = arith.constant 0 : index
    %73 = vector.load %arg17[%c2_37, %c0_38, %c0_39] : memref<4x8x8xbf16, #tpu.memory_space<vmem>>, vector<1x8x8xbf16>
    tpu.vector_store %arg17[%c2_37, %c0_38, %c0_39], %72 {strides = array<i32>} : memref<4x8x8xbf16, #tpu.memory_space<vmem>>, vector<1x8x8xbf16>,
    %74 = vector.extract_strided_slice %37 {offsets = [0, 24], sizes = [8, 8], strides = [1, 1]} : vector<8x96xf32> to vector<8x8xf32>
    %75 = vector.shape_cast %74 : vector<8x8xf32> to vector<1x8x8xf32>
    %76 = arith.truncf %75 : vector<1x8x8xf32> to vector<1x8x8xbf16>
    %c3 = arith.constant 3 : index
    %c0_40 = arith.constant 0 : index
    %c0_41 = arith.constant 0 : index
    %77 = vector.load %arg15[%c3, %c0_40, %c0_41] : memref<4x8x8xbf16, #tpu.memory_space<vmem>>, vector<1x8x8xbf16>
    tpu.vector_store %arg15[%c3, %c0_40, %c0_41], %76 {strides = array<i32>} : memref<4x8x8xbf16, #tpu.memory_space<vmem>>, vector<1x8x8xbf16>,
    %78 = vector.extract_strided_slice %37 {offsets = [0, 56], sizes = [8, 8], strides = [1, 1]} : vector<8x96xf32> to vector<8x8xf32>
    %79 = vector.shape_cast %78 : vector<8x8xf32> to vector<1x8x8xf32>
    %80 = arith.truncf %79 : vector<1x8x8xf32> to vector<1x8x8xbf16>
    %c3_42 = arith.constant 3 : index
    %c0_43 = arith.constant 0 : index
    %c0_44 = arith.constant 0 : index
    %81 = vector.load %arg16[%c3_42, %c0_43, %c0_44] : memref<4x8x8xbf16, #tpu.memory_space<vmem>>, vector<1x8x8xbf16>
    tpu.vector_store %arg16[%c3_42, %c0_43, %c0_44], %80 {strides = array<i32>} : memref<4x8x8xbf16, #tpu.memory_space<vmem>>, vector<1x8x8xbf16>,
    %82 = vector.extract_strided_slice %37 {offsets = [0, 88], sizes = [8, 8], strides = [1, 1]} : vector<8x96xf32> to vector<8x8xf32>
    %83 = vector.shape_cast %82 : vector<8x8xf32> to vector<1x8x8xf32>
    %84 = arith.truncf %83 : vector<1x8x8xf32> to vector<1x8x8xbf16>
    %c3_45 = arith.constant 3 : index
    %c0_46 = arith.constant 0 : index
    %c0_47 = arith.constant 0 : index
    %85 = vector.load %arg17[%c3_45, %c0_46, %c0_47] : memref<4x8x8xbf16, #tpu.memory_space<vmem>>, vector<1x8x8xbf16>
    tpu.vector_store %arg17[%c3_45, %c0_46, %c0_47], %84 {strides = array<i32>} : memref<4x8x8xbf16, #tpu.memory_space<vmem>>, vector<1x8x8xbf16>,
    %c0_48 = arith.constant 0 : index
    %c0_49 = arith.constant 0 : index
    %c0_50 = arith.constant 0 : index
    %86 = vector.load %arg15[%c0_48, %c0_49, %c0_50] : memref<4x8x8xbf16, #tpu.memory_space<vmem>>, vector<4x8x8xbf16>
    %87 = tpu.iota {dimensions = array<i32: 0>} : vector<8x8xi32>
    %88 = tpu.iota {dimensions = array<i32: 1>} : vector<8x8xi32>
    %cst_51 = arith.constant -1.000000e+30 : f32
    %89 = vector.broadcast %cst_51 : f32 to vector<4x8x1xf32>
    %cst_52 = arith.constant 0.000000e+00 : f32
    %90 = vector.broadcast %cst_52 : f32 to vector<4x8x1xf32>
    %cst_53 = arith.constant 0.000000e+00 : f32
    %91 = vector.broadcast %cst_53 : f32 to vector<4x8x8xf32>
    %c0_i32 = arith.constant 0 : i32
    %c8_i32 = arith.constant 8 : i32
    %92 = arith.muli %c0_i32, %c8_i32 : i32
    %93 = tpu.assume_multiple %92, 8 : i32
    %c0_54 = arith.constant 0 : index
    %94 = arith.index_cast %93 : i32 to index
    %c0_55 = arith.constant 0 : index
    %95 = vector.load %arg16[%c0_54, %94, %c0_55] : memref<4x8x8xbf16, #tpu.memory_space<vmem>>, vector<4x8x8xbf16>
    %c0_56 = arith.constant 0 : index
    %96 = arith.index_cast %93 : i32 to index
    %c0_57 = arith.constant 0 : index
    %97 = vector.load %arg17[%c0_56, %96, %c0_57] : memref<4x8x8xbf16, #tpu.memory_space<vmem>>, vector<4x8x8xbf16>
    "tpu.trace_start"() <{level = 10 : i32, message = "bqd,bkd->bqk"}> : () -> ()
    %cst_58 = arith.constant dense<0.000000e+00> : vector<4x8x8xf32>
    %98 = tpu.matmul %86, %95, %cst_58 {dimension_numbers = #tpu.dot_dimension_numbers<[2], [2], [1], [1], [0, 0, 0, 1, 1, 1], [0], [0]>} : vector<4x8x8xbf16>, vector<4x8x8xbf16>, vector<4x8x8xf32> -> vector<4x8x8xf32>
    "tpu.trace_stop"() : () -> ()
    %c8_i32_59 = arith.constant 8 : i32
    %99 = arith.muli %c0_i32, %c8_i32_59 : i32
    %100 = vector.broadcast %99 : i32 to vector<8x8xi32>
    %101 = arith.addi %88, %100 : vector<8x8xi32>
    %102 = arith.cmpi sle, %101, %87 : vector<8x8xi32>
    %103 = vector.shape_cast %102 : vector<8x8xi1> to vector<1x8x8xi1>
    %cst_60 = arith.constant -1.000000e+30 : f32
    %104 = vector.shape_cast %103 : vector<1x8x8xi1> to vector<1x8x8xi1>
    %105 = vector.broadcast %104 : vector<1x8x8xi1> to vector<4x8x8xi1>
    %106 = vector.broadcast %cst_60 : f32 to vector<4x8x8xf32>
    %107 = arith.select %105, %98, %106 : vector<4x8x8xi1>, vector<4x8x8xf32>
    %cst_61 = arith.constant dense<0xFF800000> : vector<4x8xf32>
    %108 = vector.multi_reduction <maximumf>, %107, %cst_61 [2] : vector<4x8x8xf32> to vector<4x8xf32>
    %109 = vector.shape_cast %108 : vector<4x8xf32> to vector<4x8x1xf32>
    %110 = arith.maximumf %89, %109 : vector<4x8x1xf32>
    %111 = arith.subf %89, %110 : vector<4x8x1xf32>
    %112 = math.exp %111 : vector<4x8x1xf32>
    %113 = vector.broadcast %110 : vector<4x8x1xf32> to vector<4x8x8xf32>
    %114 = arith.subf %107, %113 : vector<4x8x8xf32>
    %115 = math.exp %114 : vector<4x8x8xf32>
    %116 = arith.mulf %112, %90 : vector<4x8x1xf32>
    %cst_62 = arith.constant dense<0.000000e+00> : vector<4x8xf32>
    %117 = vector.multi_reduction <add>, %115, %cst_62 [2] : vector<4x8x8xf32> to vector<4x8xf32>
    %118 = vector.shape_cast %117 : vector<4x8xf32> to vector<4x8x1xf32>
    %119 = arith.addf %116, %118 : vector<4x8x1xf32>
    %120 = arith.truncf %115 : vector<4x8x8xf32> to vector<4x8x8xbf16>
    "tpu.trace_start"() <{level = 10 : i32, message = "bqk,bkd->bqd"}> : () -> ()
    %cst_63 = arith.constant dense<0.000000e+00> : vector<4x8x8xf32>
    %121 = tpu.matmul %120, %97, %cst_63 {dimension_numbers = #tpu.dot_dimension_numbers<[2], [1], [1], [2], [0, 0, 0, 1, 1, 2], [0], [0]>} : vector<4x8x8xbf16>, vector<4x8x8xbf16>, vector<4x8x8xf32> -> vector<4x8x8xf32>
    "tpu.trace_stop"() : () -> ()
    %122 = vector.broadcast %112 : vector<4x8x1xf32> to vector<4x8x8xf32>
    %123 = arith.mulf %122, %91 : vector<4x8x8xf32>
    %124 = arith.addf %123, %121 : vector<4x8x8xf32>
    %c1_i32 = arith.constant 1 : i32
    %125 = tpu.reciprocal %119 {approx = true} : vector<4x8x1xf32> -> vector<4x8x1xf32>
    %126 = vector.broadcast %125 : vector<4x8x1xf32> to vector<4x8x8xf32>
    %127 = arith.mulf %124, %126 : vector<4x8x8xf32>
    %cst_64 = arith.constant 0.000000e+00 : f32
    %128 = vector.broadcast %cst_64 : f32 to vector<8x32xf32>
    %129 = vector.extract_strided_slice %127 {offsets = [0, 0, 0], sizes = [1, 8, 8], strides = [1, 1, 1]} : vector<4x8x8xf32> to vector<1x8x8xf32>
    %130 = vector.shape_cast %129 : vector<1x8x8xf32> to vector<8x8xf32>
    %131 = arith.truncf %130 : vector<8x8xf32> to vector<8x8xbf16>
    %c0_65 = arith.constant 0 : index
    %c0_66 = arith.constant 0 : index
    %c0_67 = arith.constant 0 : index
    %132 = vector.load %arg6[%c0_65, %c0_66, %c0_67] : memref<4x8x32xbf16, #tpu.memory_space<vmem>>, vector<1x8x32xbf16>
    %133 = vector.shape_cast %132 : vector<1x8x32xbf16> to vector<8x32xbf16>
    %cst_68 = arith.constant dense<0.000000e+00> : vector<8x32xf32>
    %134 = tpu.matmul %131, %133, %cst_68 {dimension_numbers = #tpu.dot_dimension_numbers<[1], [0], [0], [1], [0, 0, 1, 1], [], []>} : vector<8x8xbf16>, vector<8x32xbf16>, vector<8x32xf32> -> vector<8x32xf32>
    %135 = arith.addf %128, %134 : vector<8x32xf32>
    %136 = vector.extract_strided_slice %127 {offsets = [1, 0, 0], sizes = [1, 8, 8], strides = [1, 1, 1]} : vector<4x8x8xf32> to vector<1x8x8xf32>
    %137 = vector.shape_cast %136 : vector<1x8x8xf32> to vector<8x8xf32>
    %138 = arith.truncf %137 : vector<8x8xf32> to vector<8x8xbf16>
    %c1_69 = arith.constant 1 : index
    %c0_70 = arith.constant 0 : index
    %c0_71 = arith.constant 0 : index
    %139 = vector.load %arg6[%c1_69, %c0_70, %c0_71] : memref<4x8x32xbf16, #tpu.memory_space<vmem>>, vector<1x8x32xbf16>
    %140 = vector.shape_cast %139 : vector<1x8x32xbf16> to vector<8x32xbf16>
    %cst_72 = arith.constant dense<0.000000e+00> : vector<8x32xf32>
    %141 = tpu.matmul %138, %140, %cst_72 {dimension_numbers = #tpu.dot_dimension_numbers<[1], [0], [0], [1], [0, 0, 1, 1], [], []>} : vector<8x8xbf16>, vector<8x32xbf16>, vector<8x32xf32> -> vector<8x32xf32>
    %142 = arith.addf %135, %141 : vector<8x32xf32>
    %143 = vector.extract_strided_slice %127 {offsets = [2, 0, 0], sizes = [1, 8, 8], strides = [1, 1, 1]} : vector<4x8x8xf32> to vector<1x8x8xf32>
    %144 = vector.shape_cast %143 : vector<1x8x8xf32> to vector<8x8xf32>
    %145 = arith.truncf %144 : vector<8x8xf32> to vector<8x8xbf16>
    %c2_73 = arith.constant 2 : index
    %c0_74 = arith.constant 0 : index
    %c0_75 = arith.constant 0 : index
    %146 = vector.load %arg6[%c2_73, %c0_74, %c0_75] : memref<4x8x32xbf16, #tpu.memory_space<vmem>>, vector<1x8x32xbf16>
    %147 = vector.shape_cast %146 : vector<1x8x32xbf16> to vector<8x32xbf16>
    %cst_76 = arith.constant dense<0.000000e+00> : vector<8x32xf32>
    %148 = tpu.matmul %145, %147, %cst_76 {dimension_numbers = #tpu.dot_dimension_numbers<[1], [0], [0], [1], [0, 0, 1, 1], [], []>} : vector<8x8xbf16>, vector<8x32xbf16>, vector<8x32xf32> -> vector<8x32xf32>
    %149 = arith.addf %142, %148 : vector<8x32xf32>
    %150 = vector.extract_strided_slice %127 {offsets = [3, 0, 0], sizes = [1, 8, 8], strides = [1, 1, 1]} : vector<4x8x8xf32> to vector<1x8x8xf32>
    %151 = vector.shape_cast %150 : vector<1x8x8xf32> to vector<8x8xf32>
    %152 = arith.truncf %151 : vector<8x8xf32> to vector<8x8xbf16>
    %c3_77 = arith.constant 3 : index
    %c0_78 = arith.constant 0 : index
    %c0_79 = arith.constant 0 : index
    %153 = vector.load %arg6[%c3_77, %c0_78, %c0_79] : memref<4x8x32xbf16, #tpu.memory_space<vmem>>, vector<1x8x32xbf16>
    %154 = vector.shape_cast %153 : vector<1x8x32xbf16> to vector<8x32xbf16>
    %cst_80 = arith.constant dense<0.000000e+00> : vector<8x32xf32>
    %155 = tpu.matmul %152, %154, %cst_80 {dimension_numbers = #tpu.dot_dimension_numbers<[1], [0], [0], [1], [0, 0, 1, 1], [], []>} : vector<8x8xbf16>, vector<8x32xbf16>, vector<8x32xf32> -> vector<8x32xf32>
    %156 = arith.addf %149, %155 : vector<8x32xf32>
    %157 = arith.addf %1, %156 : vector<8x32xf32>
    %c0_81 = arith.constant 0 : index
    %c0_82 = arith.constant 0 : index
    %158 = vector.load %arg7[%c0_81, %c0_82] : memref<1x32xf32, #tpu.memory_space<vmem>>, vector<1x32xf32>
    %159 = vector.shape_cast %158 : vector<1x32xf32> to vector<32xf32>
    %160 = vector.shape_cast %159 : vector<32xf32> to vector<1x32xf32>
    %161 = vector.broadcast %160 : vector<1x32xf32> to vector<8x32xf32>
    %162 = arith.addf %157, %161 : vector<8x32xf32>
    %cst_83 = arith.constant dense<0.000000e+00> : vector<8xf32>
    %163 = vector.multi_reduction <add>, %162, %cst_83 [1] : vector<8x32xf32> to vector<8xf32>
    %164 = vector.shape_cast %163 : vector<8xf32> to vector<8x1xf32>
    %cst_84 = arith.constant 3.200000e+01 : f32
    %165 = vector.broadcast %cst_84 : f32 to vector<8x1xf32>
    %166 = arith.divf %164, %165 : vector<8x1xf32>
    %167 = vector.broadcast %166 : vector<8x1xf32> to vector<8x32xf32>
    %168 = arith.subf %162, %167 : vector<8x32xf32>
    %169 = arith.mulf %168, %168 : vector<8x32xf32>
    %cst_85 = arith.constant dense<0.000000e+00> : vector<8xf32>
    %170 = vector.multi_reduction <add>, %169, %cst_85 [1] : vector<8x32xf32> to vector<8xf32>
    %171 = vector.shape_cast %170 : vector<8xf32> to vector<8x1xf32>
    %cst_86 = arith.constant 3.200000e+01 : f32
    %172 = vector.broadcast %cst_86 : f32 to vector<8x1xf32>
    %173 = arith.divf %171, %172 : vector<8x1xf32>
    %174 = vector.broadcast %166 : vector<8x1xf32> to vector<8x32xf32>
    %175 = arith.subf %162, %174 : vector<8x32xf32>
    %cst_87 = arith.constant 9.99999974E-6 : f32
    %176 = vector.broadcast %cst_87 : f32 to vector<8x1xf32>
    %177 = arith.addf %173, %176 : vector<8x1xf32>
    %178 = math.rsqrt %177 : vector<8x1xf32>
    %179 = vector.broadcast %178 : vector<8x1xf32> to vector<8x32xf32>
    %180 = arith.mulf %175, %179 : vector<8x32xf32>
    %c0_88 = arith.constant 0 : index
    %c0_89 = arith.constant 0 : index
    %181 = vector.load %arg8[%c0_88, %c0_89] : memref<1x32xf32, #tpu.memory_space<vmem>>, vector<1x32xf32>
    %182 = vector.shape_cast %181 : vector<1x32xf32> to vector<32xf32>
    %183 = vector.shape_cast %182 : vector<32xf32> to vector<1x32xf32>
    %184 = vector.broadcast %183 : vector<1x32xf32> to vector<8x32xf32>
    %185 = arith.mulf %180, %184 : vector<8x32xf32>
    %c0_90 = arith.constant 0 : index
    %c0_91 = arith.constant 0 : index
    %186 = vector.load %arg9[%c0_90, %c0_91] : memref<1x32xf32, #tpu.memory_space<vmem>>, vector<1x32xf32>
    %187 = vector.shape_cast %186 : vector<1x32xf32> to vector<32xf32>
    %188 = vector.shape_cast %187 : vector<32xf32> to vector<1x32xf32>
    %189 = vector.broadcast %188 : vector<1x32xf32> to vector<8x32xf32>
    %190 = arith.addf %185, %189 : vector<8x32xf32>
    %191 = arith.truncf %190 : vector<8x32xf32> to vector<8x32xbf16>
    %c0_92 = arith.constant 0 : index
    %c0_93 = arith.constant 0 : index
    %192 = vector.load %arg10[%c0_92, %c0_93] : memref<32x64xbf16, #tpu.memory_space<vmem>>, vector<32x64xbf16>
    %cst_94 = arith.constant dense<0.000000e+00> : vector<8x64xf32>
    %193 = tpu.matmul %191, %192, %cst_94 {dimension_numbers = #tpu.dot_dimension_numbers<[1], [0], [0], [1], [0, 0, 1, 1], [], []>} : vector<8x32xbf16>, vector<32x64xbf16>, vector<8x64xf32> -> vector<8x64xf32>
    %c0_95 = arith.constant 0 : index
    %c0_96 = arith.constant 0 : index
    %194 = vector.load %arg11[%c0_95, %c0_96] : memref<1x64xf32, #tpu.memory_space<vmem>>, vector<1x64xf32>
    %195 = vector.shape_cast %194 : vector<1x64xf32> to vector<64xf32>
    %196 = vector.shape_cast %195 : vector<64xf32> to vector<1x64xf32>
    %197 = vector.broadcast %196 : vector<1x64xf32> to vector<8x64xf32>
    %198 = arith.addf %193, %197 : vector<8x64xf32>
    %cst_97 = arith.constant 0.707106769 : f32
    %199 = vector.broadcast %cst_97 : f32 to vector<8x64xf32>
    %200 = arith.mulf %198, %199 : vector<8x64xf32>
    %201 = math.erf %200 : vector<8x64xf32>
    %cst_98 = arith.constant 5.000000e-01 : f32
    %202 = vector.broadcast %cst_98 : f32 to vector<8x64xf32>
    %203 = arith.mulf %202, %201 : vector<8x64xf32>
    %cst_99 = arith.constant 5.000000e-01 : f32
    %204 = vector.broadcast %cst_99 : f32 to vector<8x64xf32>
    %205 = arith.addf %204, %203 : vector<8x64xf32>
    %206 = arith.mulf %198, %205 : vector<8x64xf32>
    %207 = arith.truncf %206 : vector<8x64xf32> to vector<8x64xbf16>
    %c0_100 = arith.constant 0 : index
    %c0_101 = arith.constant 0 : index
    %208 = vector.load %arg12[%c0_100, %c0_101] : memref<64x32xbf16, #tpu.memory_space<vmem>>, vector<64x32xbf16>
    %cst_102 = arith.constant dense<0.000000e+00> : vector<8x32xf32>
    %209 = tpu.matmul %207, %208, %cst_102 {dimension_numbers = #tpu.dot_dimension_numbers<[1], [0], [0], [1], [0, 0, 1, 1], [], []>} : vector<8x64xbf16>, vector<64x32xbf16>, vector<8x32xf32> -> vector<8x32xf32>
    %c0_103 = arith.constant 0 : index
    %c0_104 = arith.constant 0 : index
    %210 = vector.load %arg13[%c0_103, %c0_104] : memref<1x32xf32, #tpu.memory_space<vmem>>, vector<1x32xf32>
    %211 = vector.shape_cast %210 : vector<1x32xf32> to vector<32xf32>
    %212 = vector.shape_cast %211 : vector<32xf32> to vector<1x32xf32>
    %213 = vector.broadcast %212 : vector<1x32xf32> to vector<8x32xf32>
    %214 = arith.addf %209, %213 : vector<8x32xf32>
    %215 = arith.addf %162, %214 : vector<8x32xf32>
    %216 = vector.shape_cast %215 : vector<8x32xf32> to vector<1x8x32xf32>
    %c0_105 = arith.constant 0 : index
    %c0_106 = arith.constant 0 : index
    %c0_107 = arith.constant 0 : index
    %217 = vector.load %arg14[%c0_105, %c0_106, %c0_107] : memref<1x8x32xf32, #tpu.memory_space<vmem>>, vector<1x8x32xf32>
    tpu.vector_store %arg14[%c0_105, %c0_106, %c0_107], %216 {strides = array<i32>} : memref<1x8x32xf32, #tpu.memory_space<vmem>>, vector<1x8x32xf32>,
    return
  }
  func.func @transform_0(%arg0: i32) -> (i32, i32, i32) {
    %c0_i32 = arith.constant 0 : i32
    %c0_i32_0 = arith.constant 0 : i32
    %c0_i32_1 = arith.constant 0 : i32
    return %arg0, %c0_i32, %c0_i32_0 : i32, i32, i32
  }
  func.func @transform_1(%arg0: i32) -> (i32, i32) {
    %c0_i32 = arith.constant 0 : i32
    %c0_i32_0 = arith.constant 0 : i32
    %c0_i32_1 = arith.constant 0 : i32
    return %c0_i32, %c0_i32_0 : i32, i32
  }
  func.func @transform_2(%arg0: i32) -> (i32, i32) {
    %c0_i32 = arith.constant 0 : i32
    %c0_i32_0 = arith.constant 0 : i32
    %c0_i32_1 = arith.constant 0 : i32
    return %c0_i32, %c0_i32_0 : i32, i32
  }
  func.func @transform_3(%arg0: i32) -> (i32, i32) {
    %c0_i32 = arith.constant 0 : i32
    %c0_i32_0 = arith.constant 0 : i32
    %c0_i32_1 = arith.constant 0 : i32
    return %c0_i32, %c0_i32_0 : i32, i32
  }
  func.func @transform_4(%arg0: i32) -> (i32, i32) {
    %c0_i32 = arith.constant 0 : i32
    %c0_i32_0 = arith.constant 0 : i32
    %c0_i32_1 = arith.constant 0 : i32
    return %c0_i32, %c0_i32_0 : i32, i32
  }
  func.func @transform_5(%arg0: i32) -> (i32, i32, i32) {
    %c0_i32 = arith.constant 0 : i32
    %c0_i32_0 = arith.constant 0 : i32
    %c0_i32_1 = arith.constant 0 : i32
    %c0_i32_2 = arith.constant 0 : i32
    return %c0_i32, %c0_i32_0, %c0_i32_1 : i32, i32, i32
  }
  func.func @transform_6(%arg0: i32) -> (i32, i32) {
    %c0_i32 = arith.constant 0 : i32
    %c0_i32_0 = arith.constant 0 : i32
    %c0_i32_1 = arith.constant 0 : i32
    return %c0_i32, %c0_i32_0 : i32, i32
  }
  func.func @transform_7(%arg0: i32) -> (i32, i32) {
    %c0_i32 = arith.constant 0 : i32
    %c0_i32_0 = arith.constant 0 : i32
    %c0_i32_1 = arith.constant 0 : i32
    return %c0_i32, %c0_i32_0 : i32, i32
  }
  func.func @transform_8(%arg0: i32) -> (i32, i32) {
    %c0_i32 = arith.constant 0 : i32
    %c0_i32_0 = arith.constant 0 : i32
    %c0_i32_1 = arith.constant 0 : i32
    return %c0_i32, %c0_i32_0 : i32, i32
  }
  func.func @transform_9(%arg0: i32) -> (i32, i32) {
    %c0_i32 = arith.constant 0 : i32
    %c0_i32_0 = arith.constant 0 : i32
    %c0_i32_1 = arith.constant 0 : i32
    return %c0_i32, %c0_i32_0 : i32, i32
  }
  func.func @transform_10(%arg0: i32) -> (i32, i32) {
    %c0_i32 = arith.constant 0 : i32
    %c0_i32_0 = arith.constant 0 : i32
    %c0_i32_1 = arith.constant 0 : i32
    return %c0_i32, %c0_i32_0 : i32, i32
  }
  func.func @transform_11(%arg0: i32) -> (i32, i32) {
    %c0_i32 = arith.constant 0 : i32
    %c0_i32_0 = arith.constant 0 : i32
    %c0_i32_1 = arith.constant 0 : i32
    return %c0_i32, %c0_i32_0 : i32, i32
  }
  func.func @transform_12(%arg0: i32) -> (i32, i32) {
    %c0_i32 = arith.constant 0 : i32
    %c0_i32_0 = arith.constant 0 : i32
    %c0_i32_1 = arith.constant 0 : i32
    return %c0_i32, %c0_i32_0 : i32, i32
  }
  func.func @transform_13(%arg0: i32) -> (i32, i32, i32) {
    %c0_i32 = arith.constant 0 : i32
    %c0_i32_0 = arith.constant 0 : i32
    %c0_i32_1 = arith.constant 0 : i32
    return %arg0, %c0_i32, %c0_i32_0 : i32, i32, i32
  }
}

</mosaic_0001>

<bundles_post_ra>
// kernel: tpu_custom_call.1
= control target key start
LH: loop header
LB: loop body
LE: loop exit
PB: predicated region body
PF: predicated region fallthrough
CT: control target
= control target key end

     0   :  { %s2635_s0 = inlined_call_operand.vmem [shape: f32[2,8,32], index: 0, kind: input, shape index: {}]   ;;  %s2636_s1 = inlined_call_operand.vmem [shape: f32[1,32], index: 1, kind: input, shape index: {}]   ;;  %s2637_s2 = inlined_call_operand.vmem [shape: f32[1,32], index: 2, kind: input, shape index: {}]   ;;  %s2638_s3 = inlined_call_operand.vmem [shape: bf16[32,96], index: 3, kind: input, shape index: {}]   ;;  %s2639_s4 = inlined_call_operand.hbm [shape: f32[1,96], index: 4, kind: input, shape index: {}]   ;;  %s2640_s5 = inlined_call_operand.vmem [shape: bf16[4,8,32], index: 5, kind: input, shape index: {}]   ;;  %s2641_s6 = inlined_call_operand.hbm [shape: f32[1,32], index: 6, kind: input, shape index: {}]   ;;  %s2642_s7 = inlined_call_operand.hbm [shape: f32[1,32], index: 7, kind: input, shape index: {}]   ;;  %s2643_s8 = inlined_call_operand.hbm [shape: f32[1,32], index: 8, kind: input, shape index: {}]   ;;  %s2644_s9 = inlined_call_operand.vmem [shape: bf16[32,64], index: 9, kind: input, shape index: {}]   ;;  %s2645_s10 = inlined_call_operand.vmem [shape: f32[1,64], index: 10, kind: input, shape index: {}]   ;;  %s2646_s11 = inlined_call_operand.vmem [shape: bf16[64,32], index: 11, kind: input, shape index: {}]   ;;  %s2647_s12 = inlined_call_operand.vmem [shape: f32[1,32], index: 12, kind: input, shape index: {}]   ;;  %s2648_s13 = inlined_call_operand.hbm [shape: f32[2,8,32], index: 13, kind: output, shape index: {}]  }
   0x1   :  { %2659 = sst [smem:[#allocation24_spill]] %s2648_s13 }
   0x2   :  { %18 = vsyncpa [#allocation6], 0 }
   0x3   :  { %19 = vsyncpa [#allocation9], 0 }
   0x4   :  { %20 = vsyncpa [#allocation12], 0 }
   0x5   :  { %21 = vsyncpa [#allocation7], 0 }
   0x6   :  { %23 = vsyncpa [#allocation7 + $0x1], 0  ;;  %s2218_s25 = smov 0   ;;  %s2220_s26 = smov 0  }
   0x7   :  { %s2222_s27 = smov 0   ;;  %s2224_s28 = smov 0  }
   0x8 LB: > { %2660 = sst [smem:[#allocation18_spill]] %s2116_s25  ;;  %s2239_s29 = sadd.s32 4294967295, %s2128_s28   ;;  %s2128_s28 = sphi %s2224_s28, %s2684_s28   ;;  %s2124_s27 = sphi %s2222_s27, %s2686_s27   ;;  %s2120_s26 = sphi %s2220_s26, %s2688_s26   ;;  %s2116_s25 = sphi %s2218_s25, %s2687_s25  }
   0x9   : > { %2661 = sst [smem:[#allocation19_spill]] %s2124_s27  ;;  %s1622_s30 = sadd.s32 4294967294, %s2128_s28  }
   0xa   : > { %2662 = sst [smem:[#allocation20_spill]] %s2128_s28  ;;  %s2243_s14 = sadd.s32 1, %s2128_s28  }
   0xb   : > { %2663 = sst [smem:[#allocation21_spill]] %s2243_s14  ;;  %s314_s15 = sadd.s32 1, %s2124_s27 }
   0xc   : > { %s311_s16 = ssub.s32 %s2128_s28, %s2243_s14  ;;  %p324_p0 = scmp.ne.s32.totalorder %s2124_s27, %s2120_s26 }
   0xd   : > { %p312_p1 = scmp.eq.s32.totalorder %s311_s16, 0  ;;  %p325_p2 = scmp.eq.s32.totalorder %s2239_s29, 1 }
   0xe   : > { %p330_p3 = scmp.ne.s32.totalorder %s2120_s26, %s2116_s25  ;;  %p331_p4 = scmp.eq.s32.totalorder %s1622_s30, 1 }
   0xf   : > { %s2254_s17 = scalar_select %p312_p1, %s2124_s27, %s314_s15  }
  0x10   : > { %p2256_p5 = por %p325_p2, %p324_p0  ;;  %p2260_p6 = por %p331_p4, %p330_p3 }
  0x11   : > { %2664 = sst [smem:[#allocation22_spill]] %s2254_s17  ;;  %p1623_p7 = scmp.ge.s32.totalorder %s2128_s28, 1 }
  0x12   : > { %s2665_s18 = scalar_select %p2256_p5, 1, 0 }
  0x13   : > { %s2666_s19 = scalar_select %p2260_p6, 1, 0 }
  0x14   : > { %p338_p8 = scmp.lt.s32.totalorder %s2128_s28, 3  ;;  %p2654_p9 = scmp.eq.s32.totalorder %s2239_s29, 0 }
  0x15   : > { %2667 = sst [smem:[#allocation23_spill]] %s2666_s19  ;;  %s2130_s21 = smov [#allocation8]  }
  0x16   : > { %p2267_p10 = pnand %p1623_p7, %p338_p8  ;;  %s374_s22 = sshll.u32 %s2130_s21, 4  ;;  %s375_s22 = int_to_ptr.vmem [resolvable:$true] %s374_s22 }
  0x17   : > { %s2131_s23 = smov [#allocation5]   ;;  %s2132_s15 = smov [#allocation10]  }
  0x18   : > { %s2668_s20 = scalar_select %p2267_p10, 1, 0 }
  0x19   : > { %p1829_p11 = pneg %p2267_p10  ;;  %s360_s24 = sshll.u32 %s2131_s23, 4  ;;  %s2279_s24 = int_to_ptr.vmem [resolvable:$true] %s360_s24 }
  0x1a   : > { %s385_s16 = sshll.u32 %s2132_s15, 4  ;;  %s1942_s21 = scalar_lea.hbm %s2641_s6, 16  ;;  %s2281_s16 = int_to_ptr.vmem [resolvable:$true] %s385_s16 }
  0x1b   : > { %p2275_p12 = pnand %p2654_p9, %p1829_p11  ;;  %p1943_p13 = scmp.ne.s32.totalorder %s2641_s6, %s1942_s21 }
  0x1c   : > { %p1949_p3 = scmp.lt.u32.totalorder %s1942_s21, %s2641_s6 }
  0x1d   : > { %p2291_p0 = pneg %p2275_p12 }
  0x1f   : > { %p1945_p1 = pnand %p2291_p0, %p1943_p13 }
  0x21   : > { %p1946_p2 = pneg %p1945_p1 }
  0x23   : > { %p1951_p4 = pnand %p1949_p3, %p1946_p2 }
  0x25   : > { %1954 = shalt.err (!%p1951_p4)
}
  0x26   : > { %s1955_s27 = scalar_lea.vmem %s375_s22, 16  ;;  %s1962_s14 = scalar_lea.vmem %s375_s22, 32 }
  0x27   : > { %p1956_p7 = scmp.ne.s32.totalorder %s375_s22, %s1955_s27  ;;  %p1963_p9 = scmp.lt.s32.totalorder %s375_s22, %s375_s22 }
  0x28   : > { %p1964_p6 = scmp.lt.s32.totalorder %s1962_s14, %s1955_s27 }
  0x29   : > { %p1958_p8 = pnand %p1956_p7, %p2291_p0 }
  0x2a   : > { %p1965_p5 = por %p1964_p6, %p1963_p9 }
  0x2b   : > { %p1959_p11 = pneg %p1958_p8 }
  0x2d   : > { %p1966_p10 = pnand %p1965_p5, %p1959_p11 }
  0x2f   : > { %1969 = shalt.err (!%p1966_p10)
}
  0x30   : > { %1835 = dma.hbm_to_vmem [thread:$0]  (!%p2275_p12), %s2641_s6, 16, %s375_s22, [#allocation9]  }
  0x31   : > { %s1970_s15 = scalar_lea.hbm %s2639_s4, 16 }
  0x32   : > { %p1971_p13 = scmp.ne.s32.totalorder %s2639_s4, %s1970_s15  ;;  %p1977_p5 = scmp.lt.u32.totalorder %s1970_s15, %s2639_s4 }
  0x34   : > { %p1973_p1 = pnand %p1971_p13, %p2291_p0 }
  0x36   : > { %p1974_p6 = pneg %p1973_p1 }
  0x38   : > { %p1979_p9 = pnand %p1977_p5, %p1974_p6 }
  0x3a   : > { %1982 = shalt.err (!%p1979_p9)
}
  0x3b   : > { %s1983_s22 = scalar_lea.vmem %s2279_s24, 16  ;;  %s1990_s13 = scalar_lea.vmem %s2279_s24, 32 }
  0x3c   : > { %p1984_p10 = scmp.ne.s32.totalorder %s2279_s24, %s1983_s22  ;;  %p1991_p4 = scmp.lt.s32.totalorder %s2279_s24, %s2279_s24 }
  0x3d   : > { %p1992_p7 = scmp.lt.s32.totalorder %s1990_s13, %s1983_s22 }
  0x3e   : > { %p1986_p2 = pnand %p1984_p10, %p2291_p0 }
  0x3f   : > { %p1993_p8 = por %p1992_p7, %p1991_p4 }
  0x40   : > { %p1987_p3 = pneg %p1986_p2 }
  0x42   : > { %p1994_p11 = pnand %p1993_p8, %p1987_p3 }
  0x44   : > { %1997 = shalt.err (!%p1994_p11)
}
  0x45   : > { %1832 = dma.hbm_to_vmem [thread:$0]  (!%p2275_p12), %s2639_s4, 16, %s2279_s24, [#allocation6]  }
  0x46   : > { %s1998_s21 = scalar_lea.hbm %s2642_s7, 16 }
  0x47   : > { %p1999_p13 = scmp.ne.s32.totalorder %s2642_s7, %s1998_s21  ;;  %p2005_p5 = scmp.lt.u32.totalorder %s1998_s21, %s2642_s7 }
  0x49   : > { %p2001_p1 = pnand %p1999_p13, %p2291_p0 }
  0x4b   : > { %p2002_p6 = pneg %p2001_p1 }
  0x4d   : > { %p2007_p9 = pnand %p2005_p5, %p2002_p6 }
  0x4f   : > { %2010 = shalt.err (!%p2007_p9)
}
  0x50   : > { %s2011_s24 = scalar_lea.vmem %s2281_s16, 16  ;;  %s2018_s13 = scalar_lea.vmem %s2281_s16, 32 }
  0x51   : > { %p2012_p10 = scmp.ne.s32.totalorder %s2281_s16, %s2011_s24  ;;  %p2019_p4 = scmp.lt.s32.totalorder %s2281_s16, %s2281_s16 }
  0x52   : > { %p2020_p7 = scmp.lt.s32.totalorder %s2018_s13, %s2011_s24 }
  0x53   : > { %p2014_p2 = pnand %p2012_p10, %p2291_p0 }
  0x54   : > { %p2021_p8 = por %p2020_p7, %p2019_p4 }
  0x55   : > { %p2015_p3 = pneg %p2014_p2 }
  0x57   : > { %p2022_p11 = pnand %p2021_p8, %p2015_p3 }
  0x59   : > { %2025 = shalt.err (!%p2022_p11)
}
  0x5a   : > { %1838 = dma.hbm_to_vmem [thread:$0]  (!%p2275_p12), %s2642_s7, 16, %s2281_s16, [#allocation9]  }
  0x5b   : > { %s2133_s19 = smov [#allocation11]   ;;  %s2026_s27 = scalar_lea.hbm %s2643_s8, 16 }
  0x5c   : > { %s396_s25 = sshll.u32 %s2133_s19, 4  ;;  %p2027_p13 = scmp.ne.s32.totalorder %s2643_s8, %s2026_s27  ;;  %s397_s25 = int_to_ptr.vmem [resolvable:$true] %s396_s25 }
  0x5d   : > { %p2033_p5 = scmp.lt.u32.totalorder %s2026_s27, %s2643_s8 }
  0x5e   : > { %p2029_p1 = pnand %p2027_p13, %p2291_p0 }
  0x60   : > { %p2030_p6 = pneg %p2029_p1 }
  0x62   : > { %p2035_p9 = pnand %p2033_p5, %p2030_p6 }
  0x64   : > { %2038 = shalt.err (!%p2035_p9)
}
  0x65   : > { %s2039_s16 = scalar_lea.vmem %s397_s25, 16  ;;  %s2046_s28 = scalar_lea.vmem %s397_s25, 32 }
  0x66   : > { %p2040_p10 = scmp.ne.s32.totalorder %s397_s25, %s2039_s16  ;;  %p2047_p4 = scmp.lt.s32.totalorder %s397_s25, %s397_s25 }
  0x67   : > { %p2048_p7 = scmp.lt.s32.totalorder %s2046_s28, %s2039_s16 }
  0x68   : > { %p2042_p2 = pnand %p2040_p10, %p2291_p0 }
  0x69   : > { %p2049_p8 = por %p2048_p7, %p2047_p4 }
  0x6a   : > { %p2043_p3 = pneg %p2042_p2 }
  0x6c   : > { %p2050_p11 = pnand %p2049_p8, %p2043_p3 }
  0x6e   : > { %2053 = shalt.err (!%p2050_p11)
}
  0x6f   : > { %1841 = dma.hbm_to_vmem [thread:$0]  (!%p2275_p12), %s2643_s8, 16, %s397_s25, [#allocation12]  }
  0x70   : > { %p2671_p13 = scmp.ne.s32.totalorder %s2668_s20, 0 }
  0x71   : > { %p2672_p1 = scmp.eq.s32.totalorder (!%p2671_p13), %s2239_s29, 0 }
  0x72   : > { %428 = sbr.rel (%p2671_p13) target bundleno = 2408 (0x968), region = 72 }
  0x79   : > { %2099 = dma.done.wait (%p2672_p1), [#allocation6], 16   ;;  %p2673_p0 = pmov %p2672_p1 }
  0x7b   : > { %2101 = vsyncadd (%p2673_p0), [#allocation6], 4294967280  ;;  %p2674_p6 = pmov %p2673_p0 }
  0x7c   : > { %p2675_p5 = pmov %p2673_p0 }
  0x7d   : > { %2103 = dma.done.wait (%p2674_p6), [#allocation9], 32  }
  0x7e   : > { %2105 = vsyncadd (%p2675_p5), [#allocation9], 4294967264  ;;  %p2676_p9 = pmov %p2673_p0 }
  0x7f   : > { %p2677_p12 = pmov %p2673_p0 }
  0x80   : > { %2107 = dma.done.wait (%p2676_p9), [#allocation12], 16  }
  0x81   : > { %2109 = vsyncadd (%p2677_p12), [#allocation12], 4294967280  ;;  %p483_p10 = scmp.lt.s32.totalorder %s2239_s29, 1  ;;  %vm489_vm0 = vcmask 261120   ;;  %v1904_v7 = vld [vmem:[%s2638_s3] sm:$0xff]   ;;  %v2134_v8 = vmov 0.0   ;;  %v650_v49 = vlaneseq }
  0x82   : > { %1711 = vmatprep.subr.bf16.mxu1 %v2134_v8  ;;  %vm2135_vm1 = vmmov 0   ;;  %v1905_v9 = vld [vmem:[%s2638_s3 + $0x8] sm:$0xff]   ;;  %1725 = vmatprep.subr.bf16.mxu0 %v2134_v8  ;;  %v1636_v14 = vld [vmem:[%s2636_s1] ss:$0 sm:$0xff]  ;;  %v1638_v20 = vld [vmem:[#allocation5] ss:$0 sm:$0xff] }
  0x83   : > { %s484_s20 = scalar_select %p483_p10, %s2239_s29, 1  ;;  %1715 = vmatprep.mubr.msk.bf16.mxu1 %vm2135_vm1, %v2134_v8  ;;  %1712 = vmatpush3.bf16.msra.mxu1 %v1904_v7  ;;  %v1637_v16 = vld [vmem:[%s2637_s2] ss:$0 sm:$0xff]  ;;  %vm588_vm2 = vcmask 60416   ;;  %vm662_vm3 = vcmask 64512   ;;  %vm921_vm4 = vcmask 1043456  }
  0x84   : > { %1713 = vmatprep.subr.bf16.mxu1 %v2134_v8  ;;  %1727 = vmatprep.mubr.msk.bf16.mxu0 %vm2135_vm1, %v2134_v8  ;;  %s2136_s17 = smov 120   ;;  %s2137_s19 = smov 96   ;;  %v651_v50 = vshrl.u32 %v650_v49, 7  ;;  %v653_v51 = vand.u32 127, %v650_v49  ;;  %vm1462_vm6 = vcmask 523264  }
  0x85   : > { %s1635_s30 = sshll.u32 %s484_s20, 3  ;;  %s2138_s20 = smov 88  }
  0x86   : > { %s486_s21 = scalar_lea.vmem %s2635_s0, %s1635_s30  ;;  %s2139_s30 = smov 80   ;;  %vm847_vm5 = vcmp.le.s32.totalorder %v653_v51, %v651_v50  ;;  %v1116_v51 = vld [vmem:[%s2640_s5] sm:$0xf] }
  0x87   : > { %v2392_v0 = vld [vmem:[%s486_s21] sm:$0xff]  ;;  %1714 = vmatpush3.bf16.msra.mxu1 %v1905_v9  ;;  %s2140_s23 = smov 72   ;;  %s2141_s25 = smov 112  }
  0x88   : > { %v490_v1 = vsel %vm489_vm0, %v2392_v0, 0.0  ;;  %1719 = vmatprep.subr.bf16.mxu1 %v2134_v8  ;;  %s2142_s21 = smov 104   ;;  %s2143_s15 = smov 64  }
  0x89   : > { %491 = vadd.xlane.f32.xlu0 %v490_v1  ;;  %s2144_s27 = smov 48   ;;  %s2145_s14 = smov 40  }
  0x8a   : > { %s2146_s22 = smov 56   ;;  %s2678_s13 = sld [smem:[#allocation24_spill]] }
  0x8b   : > { %p2679_p3 = scmp.ne.s32.totalorder %s2665_s18, 0 }
 0x116   : > { %v492_v2 = vpop.xlane.xlu0 %491 }
 0x117   : > { %v494_v3 = vmul.f32 0.03125, %v492_v2 }
 0x119   : > { %v495_v4 = vsub.f32 %v2392_v0, %v494_v3 }
 0x11b   : > { %v496_v5 = vmul.f32 %v495_v4, %v495_v4 }
 0x11d   : > { %v497_v6 = vsel %vm489_vm0, %v496_v5, 0.0 }
 0x11e   : > { %498 = vadd.xlane.f32.xlu0 %v497_v6 }
 0x1ab   : > { %v499_v10 = vpop.xlane.xlu0 %498 }
 0x1ac   : > { %v500_v11 = vmul.f32 0.03125, %v499_v10 }
 0x1ae   : > { %v501_v12 = vadd.f32 1e-05, %v500_v11 }
 0x1b0   : > { %1912 = vrsqrt.f32 %v501_v12 }
 0x1ba   : > { %v1913_v13 = vpop.eup %1912 }
 0x1bb   : > { %v503_v15 = vmul.f32 %v1913_v13, %v495_v4 }
 0x1bd   : > { %v511_v17 = vmul.f32 %v1636_v14, %v503_v15 }
 0x1bf   : > { %v519_v18 = vadd.f32 %v1637_v16, %v511_v17 }
 0x1c1   : > { %v520_v19 = vpack.c.bf16 %v519_v18, %v519_v18 }
 0x1c3   : > { %1716 = vmatmul.mubr.msk.bf16.vlgmr.msra.gmra.mrb[0].mxu1 %vm489_vm0, %v520_v19 }
 0x1c4   : > { %1721 = vmatprep.mubr.msk.bf16.mxu1 %vm2135_vm1, %v2134_v8 }
 0x296   : > { %v581_v21 = vpop.f32.mrb[0].mxu1 }
 0x297   : > { %v582_v22 = vadd.f32 %v1638_v20, %v581_v21  ;;  %v1717_v23 = vpop.f32.mrb[1].mxu1 }
 0x298   : > { %v584_v24 = vpop.f32.mrb[2].mxu1 }
 0x299   : > { %v2421_v25 = vpack.c.bf16 %v582_v22, %v582_v22  ;;  %v1718_v26 = vpop.f32.mrb[3].mxu1 }
 0x29b   : > { %601 = vrot.lane.b32.xlu0 %v2421_v25, %s2136_s17  ;;  %593 = vrot.lane.b32.xlu1 %v2421_v25, %s2137_s19  ;;  %589 = vst.msk [vmem:[#allocation2] sm:$0xf] %vm588_vm2, %v2421_v25  ;;  %s2147_s17 = smov [#allocation13]  }
 0x29c   : > { %s2058_s19 = sshll.u32 %s2147_s17, 4  ;;  %s2059_s19 = int_to_ptr.vmem [resolvable:$false] %s2058_s19 }
 0x29f   : > { %606 = vrot.lane.b32.xlu1 %v2421_v25, %s2138_s20  ;;  %s2060_s20 = scalar_lea.vmem %s2059_s19, 256 }
 0x2a2   : > { %v646_v37 = vld [vmem:[#allocation2] sm:$0xf] }
 0x2a3   : > { %621 = vrot.lane.b32.xlu1 %v2421_v25, %s2139_s30  ;;  %s480_s30 = sand.u32 1, %s2120_s26  }
 0x2a7   : > { %636 = vrot.lane.b32.xlu1 %v2421_v25, %s2140_s23  ;;  %s1634_s23 = sshll.u32 %s480_s30, 3 }
 0x2ab   : > { %616 = vrot.lane.b32.xlu1 %v2421_v25, %s2141_s25 }
 0x2af   : > { %631 = vrot.lane.b32.xlu1 %v2421_v25, %s2142_s21 }
 0x2b3   : > { %597 = vrot.lane.b32.xlu1 %v2421_v25, %s2143_s15  ;;  %s1672_s15 = sshll.u32 %s2239_s29, 7  ;;  %s1509_s29 = scalar_lea.sflag [#allocation7], %s480_s30 }
 0x2b4   : > { %s2592_s16 = scalar_lea.hbm %s2678_s13, %s1672_s15 }
 0x30d   : > { %v602_v27 = vpop.permute.xlu0 %601  ;;  %v594_v28 = vpop.permute.xlu1 %593 }
 0x30e   : > { %605 = vst.msk [vmem:[#allocation2 + $0x4] sm:$0xf] %vm588_vm2, %v602_v27  ;;  %596 = vst.msk [vmem:[#allocation3] sm:$0xf] %vm588_vm2, %v594_v28 }
 0x311   : > { %v607_v29 = vpop.permute.xlu1 %606 }
 0x312   : > { %610 = vst.msk [vmem:[#allocation3 + $0x4] sm:$0xf] %vm588_vm2, %v607_v29 }
 0x315   : > { %v622_v30 = vpop.permute.xlu1 %621  ;;  %v654_v31 = vld [vmem:[#allocation3] sm:$0xf]  ;;  %v647_v41 = vld [vmem:[#allocation2 + $0x4] sm:$0xf] }
 0x316   : > { %625 = vst.msk [vmem:[#allocation3 + $0x8] sm:$0xf] %vm588_vm2, %v622_v30  ;;  %v667_v32 = vsel %vm662_vm3, %v654_v31, 0 }
 0x317   : > { %1720 = vmatpush3.bf16.xpose.msra.mxu1 %v667_v32 }
 0x318   : > { %1731 = vmatprep.subr.bf16.mxu1 %v2134_v8 }
 0x319   : > { %v637_v33 = vpop.permute.xlu1 %636  ;;  %v655_v34 = vld [vmem:[#allocation3 + $0x4] sm:$0xf] }
 0x31a   : > { %640 = vst.msk [vmem:[#allocation3 + $0xc] sm:$0xf] %vm588_vm2, %v637_v33  ;;  %v713_v35 = vsel %vm662_vm3, %v655_v34, 0 }
 0x31b   : > { %1726 = vmatpush3.bf16.xpose.msra.mxu0 %v713_v35 }
 0x31c   : > { %1737 = vmatprep.subr.bf16.mxu0 %v2134_v8 }
 0x31d   : > { %v617_v36 = vpop.permute.xlu1 %616  ;;  %v656_v38 = vld [vmem:[#allocation3 + $0x8] sm:$0xf] }
 0x31e   : > { %620 = vst.msk [vmem:[#allocation2 + $0x8] sm:$0xf] %vm588_vm2, %v617_v36  ;;  %1722 = vmatmul.mubr.msk.bf16.vlgmr.msra.gmra.mrb[4].mxu1 %vm662_vm3, %v646_v37  ;;  %v759_v39 = vsel %vm662_vm3, %v656_v38, 0 }
 0x31f   : > { %1732 = vmatpush3.bf16.xpose.msra.mxu1 %v759_v39  ;;  %1733 = vmatprep.mubr.msk.bf16.mxu1 %vm2135_vm1, %v2134_v8 }
 0x320   : > { %1743 = vmatprep.subr.bf16.mxu1 %v2134_v8 }
 0x321   : > { %v632_v40 = vpop.permute.xlu1 %631  ;;  %v657_v42 = vld [vmem:[#allocation3 + $0xc] sm:$0xf] }
 0x322   : > { %635 = vst.msk [vmem:[#allocation2 + $0xc] sm:$0xf] %vm588_vm2, %v632_v40  ;;  %1728 = vmatmul.mubr.msk.bf16.vlgmr.msra.gmra.mrb[0].mxu0 %vm662_vm3, %v647_v41  ;;  %v805_v43 = vsel %vm662_vm3, %v657_v42, 0 }
 0x323   : > { %1738 = vmatpush3.bf16.xpose.msra.mxu0 %v805_v43  ;;  %1739 = vmatprep.mubr.msk.bf16.mxu0 %vm2135_vm1, %v2134_v8 }
 0x324   : > { %1749 = vmatprep.subr.bf16.mxu0 %v2134_v8 }
 0x325   : > { %v598_v44 = vpop.permute.xlu1 %597  ;;  %v648_v45 = vld [vmem:[#allocation2 + $0x8] sm:$0xf] }
 0x326   : > { %600 = vst.msk [vmem:[#allocation4] sm:$0xf] %vm588_vm2, %v598_v44  ;;  %1734 = vmatmul.mubr.msk.bf16.vlgmr.msra.gmra.mrb[8].mxu1 %vm662_vm3, %v648_v45 }
 0x327   : > { %1745 = vmatprep.mubr.msk.bf16.mxu1 %vm2135_vm1, %v2134_v8 }
 0x329   : > { %v649_v46 = vld [vmem:[#allocation2 + $0xc] sm:$0xf] }
 0x32a   : > { %1740 = vmatmul.mubr.msk.bf16.vlgmr.msra.gmra.mrb[4].mxu0 %vm662_vm3, %v649_v46 }
 0x32b   : > { %1751 = vmatprep.mubr.msk.bf16.mxu0 %vm2135_vm1, %v2134_v8 }
 0x32d   : > { %v658_v47 = vld [vmem:[#allocation4] sm:$0xf] }
 0x32e   : > { %v923_v48 = vsel %vm921_vm4, %v658_v47, 0 }
 0x32f   : > { %1744 = vmatpush3.bf16.msra.mxu1 %v923_v48 }
 0x330   : > { %1755 = vmatprep.subr.bf16.mxu1 %v2134_v8 }
 0x3f1   : > { %v703_v52 = vpop.f32.mrb[4].mxu1 }
 0x3f2   : > { %v850_v53 = vsel %vm847_vm5, %v703_v52, -1e+30  ;;  %v1723_v54 = vpop.f32.mrb[5].mxu1  ;;  %v1170_v52 = vsel %vm921_vm4, %v1116_v51, 0 }
 0x3f3   : > { %v706_v55 = vpop.f32.mrb[6].mxu1  ;;  %v854_v56 = vsel %vm662_vm3, %v850_v53, -inf }
 0x3f4   : > { %855 = vmax.xlane.f32.xlu1 %v854_v56  ;;  %v1724_v57 = vpop.f32.mrb[7].mxu1 }
 0x3f5   : > { %v749_v58 = vpop.f32.mrb[0].mxu0 }
 0x3f6   : > { %v851_v59 = vsel %vm847_vm5, %v749_v58, -1e+30  ;;  %v1729_v60 = vpop.f32.mrb[1].mxu0 }
 0x3f7   : > { %v752_v61 = vpop.f32.mrb[2].mxu0  ;;  %v857_v62 = vsel %vm662_vm3, %v851_v59, -inf }
 0x3f8   : > { %858 = vmax.xlane.f32.xlu0 %v857_v62  ;;  %v1730_v63 = vpop.f32.mrb[3].mxu0 }
 0x3f9   : > { %v795_v1 = vpop.f32.mrb[8].mxu1 }
 0x3fa   : > { %v852_v2 = vsel %vm847_vm5, %v795_v1, -1e+30  ;;  %v1735_v3 = vpop.f32.mrb[9].mxu1 }
 0x3fb   : > { %v798_v4 = vpop.f32.mrb[10].mxu1  ;;  %v860_v5 = vsel %vm662_vm3, %v852_v2, -inf }
 0x3fc   : > { %861 = vmax.xlane.f32.xlu1 %v860_v5  ;;  %v1736_v6 = vpop.f32.mrb[11].mxu1 }
 0x3fd   : > { %v841_v7 = vpop.f32.mrb[4].mxu0 }
 0x3fe   : > { %v853_v9 = vsel %vm847_vm5, %v841_v7, -1e+30  ;;  %v1741_v10 = vpop.f32.mrb[5].mxu0 }
 0x3ff   : > { %v844_v11 = vpop.f32.mrb[6].mxu0  ;;  %v863_v12 = vsel %vm662_vm3, %v853_v9, -inf }
 0x400   : > { %864 = vmax.xlane.f32.xlu0 %v863_v12  ;;  %v1742_v13 = vpop.f32.mrb[7].mxu0 }
 0x40d   : > { %626 = vrot.lane.b32.xlu1 %v2421_v25, %s2144_s27  ;;  %s482_s27 = scalar_lea.vmem [#allocation13], %s1634_s23 }
 0x411   : > { %641 = vrot.lane.b32.xlu1 %v2421_v25, %s2145_s14  ;;  %s1522_s14 = sshll.u32 %s482_s27, 4  ;;  %s2594_s14 = int_to_ptr.vmem [resolvable:$true] %s1522_s14 }
 0x412   : > { %s2054_s28 = scalar_lea.vmem %s2594_s14, 128  ;;  %p2061_p8 = scmp.lt.s32.totalorder %s2594_s14, %s2059_s19 }
 0x413   : > { %p2055_p2 = scmp.ne.s32.totalorder %s2594_s14, %s2054_s28  ;;  %p2062_p11 = scmp.lt.s32.totalorder %s2060_s20, %s2054_s28 }
 0x415   : > { %p2056_p4 = pnand %p2055_p2, %p2679_p3  ;;  %p2063_p13 = por %p2062_p11, %p2061_p8 }
 0x416   : > { %611 = vrot.lane.b32.xlu0 %v2421_v25, %s2146_s22 }
 0x417   : > { %p2057_p7 = pneg %p2056_p4 }
 0x419   : > { %p2064_p1 = pnand %p2063_p13, %p2057_p7 }
 0x481   : > { %v2474_v14 = vpop.xlane.xlu1 %855 }
 0x482   : > { %v866_v15 = vmax.f32 %v2474_v14, -1e+30 }
 0x484   : > { %v882_v16 = vsub.f32 %v850_v53, %v866_v15  ;;  %v1651_v53 = vld [vmem:[%s2640_s5 + $0x4] sm:$0xf]  ;;  %v870_v55 = vsub.f32 -1e+30, %v866_v15 }
 0x485   : > { %v2479_v17 = vpop.xlane.xlu0 %858  ;;  %v1124_v54 = vsel %vm921_vm4, %v1651_v53, 0 }
 0x486   : > { %v886_v18 = vmul.f32 1.442695, %v882_v16  ;;  %v867_v19 = vmax.f32 %v2479_v17, -1e+30  ;;  %v874_v56 = vmul.f32 1.442695, %v870_v55 }
 0x488   : > { %v883_v20 = vsub.f32 %v851_v59, %v867_v19  ;;  %1914 = vpow2.f32 %v886_v18  ;;  %v871_v57 = vsub.f32 -1e+30, %v867_v19 }
 0x489   : > { %v2484_v21 = vpop.xlane.xlu1 %861 }
 0x48a   : > { %v888_v22 = vmul.f32 1.442695, %v883_v20  ;;  %v868_v23 = vmax.f32 %v2484_v21, -1e+30  ;;  %v876_v59 = vmul.f32 1.442695, %v871_v57 }
 0x48b   : > { %v1656_v21 = vld [vmem:[%s2640_s5 + $0xc] sm:$0xf] }
 0x48c   : > { %v884_v24 = vsub.f32 %v852_v2, %v868_v23  ;;  %1916 = vpow2.f32 %v888_v22  ;;  %v872_v58 = vsub.f32 -1e+30, %v868_v23 }
 0x48d   : > { %v2489_v25 = vpop.xlane.xlu0 %864  ;;  %v627_v26 = vpop.permute.xlu1 %626 }
 0x48e   : > { %v890_v27 = vmul.f32 1.442695, %v884_v24  ;;  %v869_v28 = vmax.f32 %v2489_v25, -1e+30  ;;  %630 = vst.msk [vmem:[#allocation4 + $0x8] sm:$0xf] %vm588_vm2, %v627_v26 }
 0x48f   : > { %v878_v60 = vmul.f32 1.442695, %v872_v58  ;;  %v1269_v26 = vsel %vm921_vm4, %v1656_v21, 0 }
 0x490   : > { %v885_v29 = vsub.f32 %v853_v9, %v869_v28  ;;  %1918 = vpow2.f32 %v890_v27  ;;  %v873_v61 = vsub.f32 -1e+30, %v869_v28 }
 0x491   : > { %v612_v30 = vpop.permute.xlu0 %611  ;;  %v642_v31 = vpop.permute.xlu1 %641 }
 0x492   : > { %v892_v32 = vmul.f32 1.442695, %v885_v29  ;;  %615 = vst.msk [vmem:[#allocation4 + $0x4] sm:$0xf] %vm588_vm2, %v612_v30  ;;  %645 = vst.msk [vmem:[#allocation4 + $0xc] sm:$0xf] %vm588_vm2, %v642_v31  ;;  %v1915_v33 = vpop.eup %1914 }
 0x493   : > { %v898_v34 = vsel %vm662_vm3, %v1915_v33, 0.0  ;;  %v914_v35 = vpack.c.bf16 %v1915_v33, %v1915_v33  ;;  %v880_v63 = vmul.f32 1.442695, %v873_v61 }
 0x494   : > { %1920 = vpow2.f32 %v892_v32  ;;  %899 = vadd.xlane.f32.xlu1 %v898_v34 }
 0x495   : > { %v660_v36 = vld [vmem:[#allocation4 + $0x8] sm:$0xf]  ;;  %1746 = vmatmul.mubr.msk.bf16.vlgmr.msra.gmra.mrb[12].mxu1 %vm662_vm3, %v914_v35  ;;  %1922 = vpow2.f32 %v874_v56 }
 0x496   : > { %v1015_v37 = vsel %vm921_vm4, %v660_v36, 0  ;;  %v1917_v38 = vpop.eup %1916  ;;  %1757 = vmatprep.mubr.msk.bf16.mxu1 %vm2135_vm1, %v2134_v8  ;;  %1924 = vpow2.f32 %v876_v59 }
 0x497   : > { %1756 = vmatpush3.bf16.msra.mxu1 %v1015_v37  ;;  %v901_v39 = vsel %vm662_vm3, %v1917_v38, 0.0  ;;  %v915_v46 = vpack.c.bf16 %v1917_v38, %v1917_v38  ;;  %1926 = vpow2.f32 %v878_v60  ;;  %v1654_v37 = vld [vmem:[%s2640_s5 + $0x8] sm:$0xf] }
 0x498   : > { %1767 = vmatprep.subr.bf16.mxu1 %v2134_v8  ;;  %902 = vadd.xlane.f32.xlu0 %v901_v39  ;;  %1928 = vpow2.f32 %v880_v63 }
 0x499   : > { %v659_v40 = vld [vmem:[#allocation4 + $0x4] sm:$0xf]  ;;  %v661_v43 = vld [vmem:[#allocation4 + $0xc] sm:$0xf] }
 0x49a   : > { %v969_v41 = vsel %vm921_vm4, %v659_v40, 0  ;;  %v1919_v42 = vpop.eup %1918  ;;  %v1061_v47 = vsel %vm921_vm4, %v661_v43, 0  ;;  %v1219_v43 = vsel %vm921_vm4, %v1654_v37, 0 }
 0x49b   : > { %1750 = vmatpush3.bf16.msra.mxu0 %v969_v41  ;;  %v904_v44 = vsel %vm662_vm3, %v1919_v42, 0.0  ;;  %v916_v45 = vpack.c.bf16 %v1919_v42, %v1919_v42 }
 0x49c   : > { %1761 = vmatprep.subr.bf16.mxu0 %v2134_v8  ;;  %905 = vadd.xlane.f32.xlu0 %v904_v44 }
 0x49d   : > { %1758 = vmatmul.mubr.msk.bf16.vlgmr.msra.gmra.mrb[16].mxu1 %vm662_vm3, %v916_v45 }
 0x49e   : > { %1752 = vmatmul.mubr.msk.bf16.vlgmr.msra.gmra.mrb[8].mxu0 %vm662_vm3, %v915_v46  ;;  %v1921_v48 = vpop.eup %1920  ;;  %1769 = vmatprep.mubr.msk.bf16.mxu1 %vm2135_vm1, %v2134_v8 }
 0x49f   : > { %1762 = vmatpush3.bf16.msra.mxu0 %v1061_v47  ;;  %1763 = vmatprep.mubr.msk.bf16.mxu0 %vm2135_vm1, %v2134_v8  ;;  %v907_v49 = vsel %vm662_vm3, %v1921_v48, 0.0  ;;  %v917_v50 = vpack.c.bf16 %v1921_v48, %v1921_v48  ;;  %v1923_v62 = vpop.eup %1922 }
 0x4a0   : > { %1773 = vmatprep.subr.bf16.mxu0 %v2134_v8  ;;  %908 = vadd.xlane.f32.xlu0 %v907_v49  ;;  %v894_v2 = vmul.f32 0.0, %v1923_v62  ;;  %v1925_v5 = vpop.eup %1924 }
 0x4a1   : > { %1768 = vmatpush3.bf16.msra.mxu1 %v1124_v54  ;;  %v1927_v6 = vpop.eup %1926  ;;  %v895_v7 = vmul.f32 0.0, %v1925_v5 }
 0x4a2   : > { %1779 = vmatprep.subr.bf16.mxu1 %v2134_v8  ;;  %v896_v10 = vmul.f32 0.0, %v1927_v6  ;;  %v1929_v13 = vpop.eup %1928 }
 0x4a3   : > { %v897_v19 = vmul.f32 0.0, %v1929_v13 }
 0x4a6   : > { %1764 = vmatmul.mubr.msk.bf16.vlgmr.msra.gmra.mrb[12].mxu0 %vm662_vm3, %v917_v50 }
 0x4a7   : > { %1775 = vmatprep.mubr.msk.bf16.mxu0 %vm2135_vm1, %v2134_v8  ;;  %1774 = vmatpush3.bf16.msra.mxu0 %v1170_v52 }
 0x4a8   : > { %1785 = vmatprep.subr.bf16.mxu0 %v2134_v8 }
 0x521   : > { %v900_v1 = vpop.xlane.xlu1 %899 }
 0x522   : > { %v910_v4 = vadd.f32 %v900_v1, %v894_v2 }
 0x524   : > { %1930 = vrcp.f32 %v910_v4 }
 0x525   : > { %v903_v3 = vpop.xlane.xlu0 %902 }
 0x526   : > { %v911_v11 = vadd.f32 %v903_v3, %v895_v7 }
 0x528   : > { %1932 = vrcp.f32 %v911_v11 }
 0x529   : > { %v906_v9 = vpop.xlane.xlu0 %905 }
 0x52a   : > { %v912_v12 = vadd.f32 %v906_v9, %v896_v10 }
 0x52c   : > { %1934 = vrcp.f32 %v912_v12 }
 0x52d   : > { %v909_v15 = vpop.xlane.xlu0 %908 }
 0x52e   : > { %v1931_v18 = vpop.eup %1930  ;;  %v913_v24 = vadd.f32 %v909_v15, %v897_v19 }
 0x530   : > { %1936 = vrcp.f32 %v913_v24  ;;  %v1659_v24 = vld [vmem:[#allocation10] ss:$0 sm:$0xff] }
 0x532   : > { %v1933_v29 = vpop.eup %1932 }
 0x536   : > { %v1935_v34 = vpop.eup %1934 }
 0x53a   : > { %v1937_v47 = vpop.eup %1936 }
 0x568   : > { %v959_v14 = vpop.f32.mrb[12].mxu1 }
 0x569   : > { %v1103_v16 = vadd.f32 %v959_v14, %v894_v2  ;;  %v1747_v17 = vpop.f32.mrb[13].mxu1 }
 0x56a   : > { %v962_v20 = vpop.f32.mrb[14].mxu1 }
 0x56b   : > { %v1111_v22 = vmul.f32 %v1931_v18, %v1103_v16  ;;  %v1748_v23 = vpop.f32.mrb[15].mxu1 }
 0x56d   : > { %v1115_v25 = vpack.c.bf16 %v1111_v22, %v1111_v22 }
 0x56f   : > { %1776 = vmatmul.mubr.msk.bf16.vlgmr.msra.gmra.mrb[16].mxu0 %vm662_vm3, %v1115_v25 }
 0x570   : > { %v1051_v27 = vpop.f32.mrb[16].mxu1  ;;  %1786 = vmatpush3.bf16.msra.mxu0 %v1269_v26  ;;  %1787 = vmatprep.mubr.msk.bf16.mxu0 %vm2135_vm1, %v2134_v8  ;;  %v1660_v26 = vld [vmem:[#allocation11] ss:$0 sm:$0xff] }
 0x571   : > { %v1005_v28 = vpop.f32.mrb[8].mxu0  ;;  %v1105_v30 = vadd.f32 %v1051_v27, %v896_v10  ;;  %v1759_v32 = vpop.f32.mrb[17].mxu1  ;;  %1799 = vmatprep.subr.bf16.mxu0 %v2134_v8  ;;  %v1658_v10 = vld [vmem:[#allocation8] ss:$0 sm:$0xff] }
 0x572   : > { %v1104_v31 = vadd.f32 %v1005_v28, %v895_v7  ;;  %v1753_v33 = vpop.f32.mrb[9].mxu0  ;;  %v1054_v35 = vpop.f32.mrb[18].mxu1  ;;  %v1910_v32 = vld [vmem:[%s2646_s11 + $0x10] sm:$0xff]  }
 0x573   : > { %v1008_v36 = vpop.f32.mrb[10].mxu0  ;;  %v1113_v38 = vmul.f32 %v1935_v34, %v1105_v30  ;;  %v1760_v40 = vpop.f32.mrb[19].mxu1  ;;  %v1908_v30 = vld [vmem:[%s2646_s11] sm:$0xff]   ;;  %v1911_v33 = vld [vmem:[%s2646_s11 + $0x18] sm:$0xff]  }
 0x574   : > { %v1112_v39 = vmul.f32 %v1933_v29, %v1104_v31  ;;  %v1754_v41 = vpop.f32.mrb[11].mxu0  ;;  %v1909_v31 = vld [vmem:[%s2646_s11 + $0x8] sm:$0xff]   ;;  %v1661_v34 = vld [vmem:[%s2645_s10] ss:$0 sm:$0xff] }
 0x575   : > { %v1212_v51 = vpack.c.bf16 %v1113_v38, %v1113_v38 }
 0x576   : > { %v1117_v42 = vpack.c.bf16 %v1112_v39, %v1112_v39 }
 0x578   : > { %1770 = vmatmul.mubr.msk.bf16.vlgmr.msra.gmra.mrb[20].mxu1 %vm662_vm3, %v1117_v42 }
 0x579   : > { %v1097_v44 = vpop.f32.mrb[12].mxu0  ;;  %1780 = vmatpush3.bf16.msra.mxu1 %v1219_v43  ;;  %1781 = vmatprep.mubr.msk.bf16.mxu1 %vm2135_vm1, %v2134_v8 }
 0x57a   : > { %v1106_v45 = vadd.f32 %v1097_v44, %v897_v19  ;;  %v1765_v46 = vpop.f32.mrb[13].mxu0  ;;  %1791 = vmatprep.subr.bf16.mxu1 %v2134_v8  ;;  %v1906_v19 = vld [vmem:[%s2644_s9] sm:$0xff]  }
 0x57b   : > { %v1100_v48 = vpop.f32.mrb[14].mxu0 }
 0x57c   : > { %v1114_v49 = vmul.f32 %v1937_v47, %v1106_v45  ;;  %v1766_v50 = vpop.f32.mrb[15].mxu0  ;;  %v1665_v45 = vld [vmem:[%s2647_s12] ss:$0 sm:$0xff] }
 0x57e   : > { %v1262_v52 = vpack.c.bf16 %v1114_v49, %v1114_v49 }
 0x580   : > { %1782 = vmatmul.mubr.msk.bf16.vlgmr.msra.gmra.mrb[24].mxu1 %vm662_vm3, %v1212_v51  ;;  %1788 = vmatmul.mubr.msk.bf16.vlgmr.msra.gmra.mrb[20].mxu0 %vm662_vm3, %v1262_v52 }
 0x581   : > { %1795 = vmatprep.mubr.msk.bf16.mxu1 %vm2135_vm1, %v2134_v8  ;;  %1807 = vmatprep.mubr.msk.bf16.mxu0 %vm2135_vm1, %v2134_v8 }
 0x582   : > { %1792 = vmatpush3.bf16.msra.mxu1 %v1906_v19  ;;  %1800 = vmatpush3.bf16.msra.mxu0 %v1908_v30 }
 0x583   : > { %1793 = vmatprep.subr.bf16.mxu1 %v2134_v8  ;;  %1801 = vmatprep.subr.bf16.mxu0 %v2134_v8 }
 0x586   : > { %1802 = vmatpush3.bf16.msra.mxu0 %v1909_v31 }
 0x587   : > { %1803 = vmatprep.subr.bf16.mxu0 %v2134_v8 }
 0x58a   : > { %1804 = vmatpush3.bf16.msra.mxu0 %v1910_v32 }
 0x58b   : > { %1805 = vmatprep.subr.bf16.mxu0 %v2134_v8 }
 0x58e   : > { %1806 = vmatpush3.bf16.msra.mxu0 %v1911_v33 }
 0x642   : > { %v1206_v53 = vpop.f32.mrb[16].mxu0 }
 0x643   : > { %v1777_v54 = vpop.f32.mrb[17].mxu0 }
 0x644   : > { %v1209_v55 = vpop.f32.mrb[18].mxu0 }
 0x645   : > { %v1778_v56 = vpop.f32.mrb[19].mxu0 }
 0x64b   : > { %v1160_v57 = vpop.f32.mrb[20].mxu1 }
 0x64c   : > { %v1207_v58 = vadd.f32 %v1206_v53, %v1160_v57  ;;  %v1771_v59 = vpop.f32.mrb[21].mxu1 }
 0x64d   : > { %v1163_v60 = vpop.f32.mrb[22].mxu1 }
 0x64e   : > { %v1772_v61 = vpop.f32.mrb[23].mxu1 }
 0x653   : > { %v1255_v62 = vpop.f32.mrb[24].mxu1  ;;  %v1305_v63 = vpop.f32.mrb[20].mxu0 }
 0x654   : > { %v1261_v1 = vadd.f32 %v1255_v62, %v1207_v58  ;;  %v1783_v2 = vpop.f32.mrb[25].mxu1  ;;  %v1789_v3 = vpop.f32.mrb[21].mxu0 }
 0x655   : > { %v1258_v4 = vpop.f32.mrb[26].mxu1  ;;  %v1308_v5 = vpop.f32.mrb[22].mxu0 }
 0x656   : > { %v1311_v6 = vadd.f32 %v1305_v63, %v1261_v1  ;;  %v1784_v7 = vpop.f32.mrb[27].mxu1  ;;  %v1790_v9 = vpop.f32.mrb[23].mxu0 }
 0x658   : > { %v1312_v11 = vadd.f32 %v1311_v6, %v2392_v0  ;;  %v1907_v0 = vld [vmem:[%s2644_s9 + $0x8] sm:$0xff]  }
 0x659   : > { %1794 = vmatpush3.bf16.msra.mxu1 %v1907_v0 }
 0x65a   : > { %v1320_v12 = vadd.f32 %v1658_v10, %v1312_v11 }
 0x65c   : > { %v1321_v13 = vsel %vm489_vm0, %v1320_v12, 0.0 }
 0x65d   : > { %1322 = vadd.xlane.f32.xlu1 %v1321_v13 }
 0x6ea   : > { %v1323_v14 = vpop.xlane.xlu1 %1322 }
 0x6eb   : > { %v1324_v15 = vmul.f32 0.03125, %v1323_v14 }
 0x6ed   : > { %v1325_v16 = vsub.f32 %v1320_v12, %v1324_v15 }
 0x6ef   : > { %v1326_v17 = vmul.f32 %v1325_v16, %v1325_v16 }
 0x6f1   : > { %v1327_v18 = vsel %vm489_vm0, %v1326_v17, 0.0 }
 0x6f2   : > { %1328 = vadd.xlane.f32.xlu0 %v1327_v18 }
 0x77f   : > { %v1329_v20 = vpop.xlane.xlu0 %1328 }
 0x780   : > { %v1330_v21 = vmul.f32 0.03125, %v1329_v20 }
 0x782   : > { %v1331_v22 = vadd.f32 1e-05, %v1330_v21 }
 0x784   : > { %1938 = vrsqrt.f32 %v1331_v22 }
 0x78e   : > { %v1939_v23 = vpop.eup %1938 }
 0x78f   : > { %v1333_v25 = vmul.f32 %v1939_v23, %v1325_v16 }
 0x791   : > { %v1341_v27 = vmul.f32 %v1659_v24, %v1333_v25 }
 0x793   : > { %v1349_v28 = vadd.f32 %v1660_v26, %v1341_v27 }
 0x795   : > { %v1350_v29 = vpack.c.bf16 %v1349_v28, %v1349_v28 }
 0x797   : > { %1796 = vmatmul.mubr.msk.bf16.vlgmr.msra.gmra.mrb[28].mxu1 %vm489_vm0, %v1350_v29 }
 0x86a   : > { %v1411_v35 = vpop.f32.mrb[28].mxu1 }
 0x86b   : > { %v1412_v36 = vadd.f32 %v1661_v34, %v1411_v35  ;;  %v1797_v37 = vpop.f32.mrb[29].mxu1 }
 0x86c   : > { %v1414_v38 = vpop.f32.mrb[30].mxu1 }
 0x86d   : > { %v1417_v39 = vmul.f32 0.70710677, %v1412_v36  ;;  %v1798_v40 = vpop.f32.mrb[31].mxu1 }
 0x86f   : > { %1940 = verf.f32 %v1417_v39 }
 0x879   : > { %v1941_v41 = vpop.eup %1940 }
 0x87a   : > { %v1419_v8 = vmul.f32 0.5, %v1941_v41 }
 0x87c   : > { %v1420_v42 = vadd.f32 0.5, %v1419_v8 }
 0x87e   : > { %v1421_v43 = vmul.f32 %v1420_v42, %v1412_v36 }
 0x880   : > { %v1422_v44 = vpack.c.bf16 %v1421_v43, %v1421_v43 }
 0x882   : > { %1808 = vmatmul.mubr.msk.bf16.vlgmr.msra.gmra.mrb[24].mxu0 %vm1462_vm6, %v1422_v44 }
 0x955   : > { %v1500_v46 = vpop.f32.mrb[24].mxu0 }
 0x956   : > { %v1501_v47 = vadd.f32 %v1665_v45, %v1500_v46  ;;  %v1809_v48 = vpop.f32.mrb[25].mxu0 }
 0x957   : > { %v1503_v49 = vpop.f32.mrb[26].mxu0 }
 0x958   : > { %v1506_v50 = vadd.f32 %v1501_v47, %v1320_v12  ;;  %v1810_v51 = vpop.f32.mrb[27].mxu0 }
 0x95a   : > { %1507 = vst.msk [vmem:[%s482_s27] sm:$0xff] %vm489_vm0, %v1506_v50 }
 0x95b   : > { %2067 = shalt.err (!%p2064_p1)
}
 0x95c   : > { %s2068_s30 = scalar_lea.hbm %s2592_s16, 128  ;;  %s2072_s21 = scalar_lea.hbm %s2678_s13, 256 }
 0x95d   : > { %p2069_p0 = scmp.ne.s32.totalorder %s2592_s16, %s2068_s30  ;;  %p2073_p9 = scmp.lt.u32.totalorder %s2592_s16, %s2678_s13 }
 0x95e   : > { %p2074_p12 = scmp.lt.u32.totalorder %s2072_s21, %s2068_s30  ;;  %p2076_p2 = scmp.lt.u32.totalorder %s2068_s30, %s2592_s16 }
 0x95f   : > { %p2070_p6 = pnand %p2069_p0, %p2679_p3 }
 0x960   : > { %p2075_p10 = por %p2074_p12, %p2073_p9 }
 0x961   : > { %p2071_p5 = pneg %p2070_p6 }
 0x962   : > { %p2077_p4 = por %p2076_p2, %p2075_p10 }
 0x964   : > { %p2078_p7 = pnand %p2077_p4, %p2071_p5 }
 0x966   : > { %2081 = shalt.err (!%p2078_p7)
}
 0x967   : > { %1827 = dma.vmem_to_hbm [thread:$0]  (%p2679_p3), %s2594_s14, 128, %s2592_s16, %s1509_s29  }
 0x968 PF: > { %s2680_s22 = sld [smem:[#allocation20_spill]]  ;;  %s2681_s24 = sld [smem:[#allocation18_spill]] }
 0x969   : > { %s2682_s28 = sld [smem:[#allocation23_spill]] }
 0x96e   : > { %p1854_p8 = scmp.ge.s32.totalorder %s2680_s22, 2  ;;  %s1534_s17 = sand.u32 1, %s2681_s24  }
 0x96f   : > { %p2683_p11 = scmp.ne.s32.totalorder %s2682_s28, 0  ;;  %s1535_s19 = scalar_lea.sflag [#allocation7], %s1534_s17 }
 0x971   : > { %p1843_p13 = pnand %p1854_p8, %p2683_p11 }
 0x973   : > { %2111 = dma.done.wait (!%p1843_p13), %s1535_s19, 128  }
 0x974   : > { %2113 = vsyncadd (!%p1843_p13), %s1535_s19, 4294967168  ;;  %s2684_s28 = sld [smem:[#allocation21_spill]]  ;;  %s2685_s20 = sld [smem:[#allocation19_spill]] }
 0x975   : > { %s2686_s27 = sld [smem:[#allocation22_spill]]  ;;  %s2687_s25 = smov %s2120_s26 }
 0x97a   : > { %p26_p1 = scmp.ge.s32.totalorder %s2684_s28, 4   ;;  %s2688_s26 = smov %s2685_s20 }
 0x97c   :  { %28 = sbr.rel (!%p26_p1) target bundleno = 8 (0x8), region = 136 }
 0x983   :  { %1540 = vsyncpa [#allocation6], 1 }
 0x984   :  { %1542 = vsyncpa [#allocation6 + $0x1], 1 }
 0x985   :  { %1543 = vsyncpa [#allocation9], 1 }
 0x986   :  { %1544 = vsyncpa [#allocation12], 1 }
 0x987   :  { %1545 = vsyncpa [#allocation7], 1 }
 0x988   :  { %1547 = vsyncpa [#allocation7 + $0x1], 1 }

</bundles_post_ra>
